<compile_context>
chip_gen: v6e
topology: v6e:2x2x1
jax: 0.10.0
libtpu: 0.0.40
codegen_flags: <defaults>
</compile_context>

<pallas_src>
import functools

import jax
import jax.numpy as jnp
from jax import lax
from jax.experimental import pallas as pl
from jax.experimental.pallas import tpu as pltpu

BN_EPS = 1e-5

# Dtype of the padded-activation slab / MXU operands.  float32 by default so
# the output matches the f32 PyTorch reference; flip to jnp.bfloat16 on
# v6e/v7x (native-rate MXU, half the slab store/load bytes) only after
# validating tolerances -- BN/gate/head math stays f32 either way.
SLAB_DTYPE = jnp.float32

_VMEM = pl.BlockSpec(memory_space=pltpu.MemorySpace.VMEM)


def _round_up(v, m):
    return -(-v // m) * m


# ------------------------------ fused kernel --------------------------------
def _fused_kernel(x_ref, w_ref, bn_ref, fc1w_ref, hrow_ref, w1x1_ref,
                  out_ref, xpad_ref, skip_ref, *, k, dil, n_mods, off):
    B, C_in, L = x_ref.shape
    cin_max, S = xpad_ref.shape[1], xpad_ref.shape[2]
    C_out, H0 = skip_ref.shape[1], skip_ref.shape[2]
    sdt = xpad_ref.dtype

    # One-time zeroing of ONLY the causal-padding strips.  Every later write
    # lands at the fixed, 128-aligned lane offset `off`, so the strips
    # [0, off), [off+L, S) and the channel rows module 0 never writes are the
    # only bytes that must be zero, and they are never overwritten afterwards.
    if off > 0:
        xpad_ref[:, :, :off] = jnp.zeros((B, cin_max, off), sdt)
    if S > off + L:
        xpad_ref[:, :, off + L:] = jnp.zeros((B, cin_max, S - off - L), sdt)
    if cin_max > C_in:
        xpad_ref[:, C_in:, off:off + L] = jnp.zeros((B, cin_max - C_in, L), sdt)
    # Seed the slab with the network input (each h is stored exactly once).
    xpad_ref[:, :C_in, off:off + L] = x_ref[...].astype(sdt)

    bn = bn_ref[...]                                    # (2*n_mods, C_out, 1)
    H_in = L
    for i in range(n_mods):
        cin_i = C_in if i == 0 else C_out
        d = dil ** i
        p = (k - 1) * d
        H_out = H_in + 2 * p

        # Dilated causal conv: k lane-shifted READS of the padded slab, each
        # feeding one accumulated MXU matmul (no im2col stores).  Zero-padded
        # weight columns make the extra slab channel rows contribute exactly 0.
        conv = None
        for j in range(k):
            start = off - 2 * p + j * d
            rhs = xpad_ref[:, :, start:start + H_out]       # (B, cin_max, H_out)
            w = w_ref[i * k + j].astype(sdt)                # (C_out, cin_max)
            wB = jnp.broadcast_to(w[None], (B, C_out, cin_max))
            dj = lax.dot_general(
                wB, rhs, dimension_numbers=(((2,), (1,)), ((0,), (0,))),
                preferred_element_type=jnp.float32)
            conv = dj if conv is None else conv + dj
        # Conv bias omitted: it cancels exactly under training-mode BN below.

        # BatchNorm2d, training mode (biased batch stats over B, H, W=1);
        # two-pass (centered) variance for PyTorch-like robustness.
        n = float(B * H_out)
        mean = jnp.sum(jnp.sum(conv, axis=2, keepdims=True), axis=0,
                       keepdims=True) / n
        cent = conv - mean
        var = jnp.sum(jnp.sum(cent * cent, axis=2, keepdims=True), axis=0,
                      keepdims=True) / n
        y = cent * lax.rsqrt(var + BN_EPS) * bn[2 * i:2 * i + 1] \
            + bn[2 * i + 1:2 * i + 2]

        # Gate tanh(y)*sigmoid(y) with a SINGLE tanh (EUP):
        # t = tanh(y/2); sigmoid(y) = (1+t)/2; tanh(y) = 2t/(1+t^2).
        t = jnp.tanh(0.5 * y)
        gated = t * (1.0 + t) / (1.0 + t * t)

        # Skip aggregation: xs0 + sum_i trailing-H0 rows of xs_i (in-place
        # VMEM accumulator; xs0 is always the shortest skip, length H0).
        if i == 0:
            skip_ref[...] = gated                            # H_out == H0 here
        else:
            skip_ref[...] += gated[:, :, H_out - H0:]

        # Residual (leading H_in rows), then store the next module's input
        # back into the slab at the same aligned offset.
        if cin_i != C_out:
            h_new, H_next = gated, H_out
        else:
            h_prev = xpad_ref[:, :C_out, off:off + H_in].astype(jnp.float32)
            h_new, H_next = h_prev + gated[:, :, :H_in], H_in
        if i + 1 < n_mods:
            xpad_ref[:, :C_out, off:off + H_next] = h_new.astype(sdt)
        H_in = H_next

    # Head: conv_1x1 + ReLU + Flatten + fc1 + ReLU + fc2 (all f32).
    hr = hrow_ref[...]                                       # (3, FC_PAD)
    v = jnp.sum(skip_ref[...] * w1x1_ref[...][None, :, :], axis=1) \
        + hr[2:3, 0:1]                                       # (B, H0)
    v = jnp.maximum(v, 0.0)
    h1 = jnp.dot(v, fc1w_ref[...], preferred_element_type=jnp.float32) \
        + hr[0:1, :]
    h1 = jnp.maximum(h1, 0.0)                                # (B, FC_PAD)
    out_ref[...] = jnp.sum(h1 * hr[1:2, :], axis=-1, keepdims=True) \
        + hr[2:3, 1:2]


# ------------------------------ full forward ---------------------------------
def gwavenet2d_forward(x, params, *, kernel_size, stride, dilation):
    """x: (B, C_in, L) in the PyTorch layout -> (B, 1)."""
    if stride != 1:
        # TODO(synk): strided (H-subsampled) causal conv not implemented.
        raise NotImplementedError("stride != 1 is not supported")
    B, C_in, L = x.shape
    mods = params["mods"]
    n_mods = len(mods)
    C_out = mods[0]["w"].shape[0]
    k = kernel_size
    cin_max = max(C_in, C_out)

    # Geometry: fixed 128-aligned write offset + slab length covering every
    # module's (2p, p)-padded read window.
    H_in, need, p_hi, h_out_hi, H0 = L, L, 0, 0, None
    for i in range(n_mods):
        cin_i = C_in if i == 0 else C_out
        p = (k - 1) * dilation ** i
        H_out = H_in + 2 * p
        p_hi = max(p_hi, p)
        need = max(need, H_in + p)
        h_out_hi = max(h_out_hi, H_out)
        if i == 0:
            H0 = H_out                    # len(xs0) == flatten width
        H_in = H_out if cin_i != C_out else H_in
    off = _round_up(2 * p_hi, 128) if p_hi else 0
    S = _round_up(off + need, 128)

    # Pack params: 6 DMAs total instead of ~28 tiny tile-padded inputs.
    W_all = jnp.zeros((n_mods * k, C_out, cin_max), jnp.float32)
    bn_all = jnp.zeros((2 * n_mods, C_out, 1), jnp.float32)
    for i, m in enumerate(mods):
        w = m["w"]                                           # (C_out, cin_i, k)
        W_all = W_all.at[i * k:(i + 1) * k, :, :w.shape[1]].set(
            jnp.transpose(w, (2, 0, 1)))
        bn_all = bn_all.at[2 * i, :, 0].set(m["gamma"])
        bn_all = bn_all.at[2 * i + 1, :, 0].set(m["beta"])
        # m["b"] (conv bias) intentionally unused: it cancels exactly under
        # training-mode BatchNorm mean subtraction.

    nf = params["fc1_w"].shape[0]
    fc_pad = _round_up(max(nf, 1), 128)      # lane-dense fc1 output width
    fc1_w = jnp.zeros((H0, fc_pad), jnp.float32).at[:, :nf].set(
        params["fc1_w"].T)
    head_rows = jnp.zeros((3, fc_pad), jnp.float32)
    head_rows = head_rows.at[0, :nf].set(params["fc1_b"])
    head_rows = head_rows.at[1, :nf].set(params["fc2_w"].reshape(-1))
    head_rows = head_rows.at[2, 0].set(params["conv1x1_b"][0])
    head_rows = head_rows.at[2, 1].set(params["fc2_b"][0])
    w1x1 = params["conv1x1_w"].reshape(C_out, 1)

    # Explicit VMEM budget (v5e scoped default is 16 MiB, v7x physical 64 MiB).
    itm = jnp.dtype(SLAB_DTYPE).itemsize
    est = ((x.size + W_all.size + bn_all.size + fc1_w.size + head_rows.size
            + w1x1.size + B * C_out * H0 + B) * 4
           + B * cin_max * S * itm                 # padded-activation slab
           + 8 * B * C_out * h_out_hi * 4)         # live per-module temporaries
    vmem_limit = int(min(64 << 20, max(32 << 20, 2 * est)))

    kern = functools.partial(_fused_kernel, k=k, dil=dilation, n_mods=n_mods,
                             off=off)
    # Whole network in ONE grid-less pallas_call: x + 5 packed param arrays in,
    # a (B, 1) result out; activations, the padded slab and the running skip
    # accumulator never leave VMEM.
    # TODO(synk): no v7x dual-TensorCore split -- training-mode BN couples the
    # whole (B, H) batch, so a 2-core grid would need a cross-core stat reduce.
    return pl.pallas_call(
        kern,
        out_shape=jax.ShapeDtypeStruct((B, 1), jnp.float32),
        in_specs=[_VMEM] * 6,
        out_specs=_VMEM,
        scratch_shapes=[pltpu.VMEM((B, cin_max, S), SLAB_DTYPE),
                        pltpu.VMEM((B, C_out, H0), jnp.float32)],
        compiler_params=pltpu.CompilerParams(vmem_limit_bytes=vmem_limit),
    )(x, W_all, bn_all, fc1_w, head_rows, w1x1)


# ------------------------------ parameter init -------------------------------
def init_params(key, *, in_channels, out_channels, kernel_size, L, n_mods=7):
    keys = jax.random.split(key, 4 * n_mods + 6)
    ki = iter(keys)
    mods = []
    cin = in_channels
    for _ in range(n_mods):
        # Conv2d weight (C_out, C_in, k, 1) stored with the trailing 1 squeezed.
        w = 0.3 * jax.random.normal(next(ki), (out_channels, cin, kernel_size),
                                    jnp.float32)
        b = 0.1 * jax.random.normal(next(ki), (out_channels,), jnp.float32)
        gamma = 1.0 + 0.1 * jax.random.normal(next(ki), (out_channels,),
                                              jnp.float32)
        beta = 0.1 * jax.random.normal(next(ki), (out_channels,), jnp.float32)
        mods.append(dict(w=w, b=b, gamma=gamma, beta=beta))
        cin = out_channels
    H0 = L + 2 * (kernel_size - 1)   # flatten width (2496 in original config)
    conv1x1_w = 0.3 * jax.random.normal(next(ki), (out_channels,), jnp.float32)
    conv1x1_b = 0.1 * jax.random.normal(next(ki), (1,), jnp.float32)
    fc1_w = 0.1 * jax.random.normal(next(ki), (50, H0), jnp.float32)
    fc1_b = 0.1 * jax.random.normal(next(ki), (50,), jnp.float32)
    fc2_w = 0.1 * jax.random.normal(next(ki), (1, 50), jnp.float32)
    fc2_b = 0.1 * jax.random.normal(next(ki), (1,), jnp.float32)
    return dict(mods=mods, conv1x1_w=conv1x1_w, conv1x1_b=conv1x1_b,
                fc1_w=fc1_w, fc1_b=fc1_b, fc2_w=fc2_w, fc2_b=fc2_b)


if __name__ == "__main__":
    B, C_IN, C_OUT, L = 2, 4, 8, 16
    K, STRIDE, DIL = 2, 1, 2

    key = jax.random.PRNGKey(0)
    kx, kp = jax.random.split(key)
    x = jax.random.normal(kx, (B, C_IN, L), jnp.float32)
    params = init_params(kp, in_channels=C_IN, out_channels=C_OUT,
                         kernel_size=K, L=L)

    fwd = jax.jit(functools.partial(gwavenet2d_forward, kernel_size=K,
                                    stride=STRIDE, dilation=DIL))
    out = fwd(x, params)
    jax.block_until_ready(out)
    assert out.shape == (B, 1) and out.dtype == jnp.float32
    print("KERNEL_OK")
</pallas_src>

<mosaic_0001>
module attributes {stable_mosaic.version = 11 : i64} {
  func.func @_fused_kernel(%arg0: memref<2x4x16xf32, #tpu.memory_space<vmem>>, %arg1: memref<14x8x8xf32, #tpu.memory_space<vmem>>, %arg2: memref<14x8x1xf32, #tpu.memory_space<vmem>>, %arg3: memref<18x128xf32, #tpu.memory_space<vmem>>, %arg4: memref<3x128xf32, #tpu.memory_space<vmem>>, %arg5: memref<8x1xf32, #tpu.memory_space<vmem>>, %arg6: memref<2x1xf32, #tpu.memory_space<vmem>>, %arg7: memref<2x8x256xf32, #tpu.memory_space<vmem>>, %arg8: memref<2x8x18xf32, #tpu.memory_space<vmem>>) attributes {dimension_semantics = [], scalar_prefetch = 0 : i64, scratch_operands = 2 : i64, tpu.core_type = #tpu.core_type<tc>} {
    %cst = arith.constant 0.000000e+00 : f32
    %0 = vector.broadcast %cst : f32 to vector<2x8x128xf32>
    %c0 = arith.constant 0 : index
    %c0_0 = arith.constant 0 : index
    %c0_1 = arith.constant 0 : index
    %1 = vector.load %arg7[%c0, %c0_0, %c0_1] : memref<2x8x256xf32, #tpu.memory_space<vmem>>, vector<2x8x128xf32>
    tpu.vector_store %arg7[%c0, %c0_0, %c0_1], %0 {strides = array<i32>} : memref<2x8x256xf32, #tpu.memory_space<vmem>>, vector<2x8x128xf32>,
    %cst_2 = arith.constant 0.000000e+00 : f32
    %2 = vector.broadcast %cst_2 : f32 to vector<2x8x112xf32>
    %c0_3 = arith.constant 0 : index
    %c0_4 = arith.constant 0 : index
    %c144 = arith.constant 144 : index
    %3 = vector.load %arg7[%c0_3, %c0_4, %c144] : memref<2x8x256xf32, #tpu.memory_space<vmem>>, vector<2x8x112xf32>
    tpu.vector_store %arg7[%c0_3, %c0_4, %c144], %2 {strides = array<i32>} : memref<2x8x256xf32, #tpu.memory_space<vmem>>, vector<2x8x112xf32>,
    %cst_5 = arith.constant 0.000000e+00 : f32
    %4 = vector.broadcast %cst_5 : f32 to vector<2x4x16xf32>
    %c0_6 = arith.constant 0 : index
    %c4 = arith.constant 4 : index
    %c128 = arith.constant 128 : index
    %5 = vector.load %arg7[%c0_6, %c4, %c128] : memref<2x8x256xf32, #tpu.memory_space<vmem>>, vector<2x4x16xf32>
    tpu.vector_store %arg7[%c0_6, %c4, %c128], %4 {strides = array<i32>} : memref<2x8x256xf32, #tpu.memory_space<vmem>>, vector<2x4x16xf32>,
    %c0_7 = arith.constant 0 : index
    %c0_8 = arith.constant 0 : index
    %c0_9 = arith.constant 0 : index
    %6 = vector.load %arg0[%c0_7, %c0_8, %c0_9] : memref<2x4x16xf32, #tpu.memory_space<vmem>>, vector<2x4x16xf32>
    %c0_10 = arith.constant 0 : index
    %c0_11 = arith.constant 0 : index
    %c128_12 = arith.constant 128 : index
    %7 = vector.load %arg7[%c0_10, %c0_11, %c128_12] : memref<2x8x256xf32, #tpu.memory_space<vmem>>, vector<2x4x16xf32>
    tpu.vector_store %arg7[%c0_10, %c0_11, %c128_12], %6 {strides = array<i32>} : memref<2x8x256xf32, #tpu.memory_space<vmem>>, vector<2x4x16xf32>,
    %c0_13 = arith.constant 0 : index
    %c0_14 = arith.constant 0 : index
    %c0_15 = arith.constant 0 : index
    %8 = vector.load %arg2[%c0_13, %c0_14, %c0_15] : memref<14x8x1xf32, #tpu.memory_space<vmem>>, vector<14x8x1xf32>
    %c0_16 = arith.constant 0 : index
    %c0_17 = arith.constant 0 : index
    %c126 = arith.constant 126 : index
    %9 = vector.load %arg7[%c0_16, %c0_17, %c126] : memref<2x8x256xf32, #tpu.memory_space<vmem>>, vector<2x8x18xf32>
    %c0_18 = arith.constant 0 : index
    %c0_19 = arith.constant 0 : index
    %c0_20 = arith.constant 0 : index
    %10 = vector.load %arg1[%c0_18, %c0_19, %c0_20] : memref<14x8x8xf32, #tpu.memory_space<vmem>>, vector<1x8x8xf32>
    %11 = vector.shape_cast %10 : vector<1x8x8xf32> to vector<8x8xf32>
    %12 = vector.shape_cast %11 : vector<8x8xf32> to vector<1x8x8xf32>
    %13 = vector.shape_cast %12 : vector<1x8x8xf32> to vector<1x8x8xf32>
    %14 = vector.broadcast %13 : vector<1x8x8xf32> to vector<2x8x8xf32>
    %cst_21 = arith.constant dense<0.000000e+00> : vector<2x8x18xf32>
    %15 = tpu.matmul %14, %9, %cst_21 {dimension_numbers = #tpu.dot_dimension_numbers<[2], [1], [1], [2], [0, 0, 0, 1, 1, 2], [0], [0]>} : vector<2x8x8xf32>, vector<2x8x18xf32>, vector<2x8x18xf32> -> vector<2x8x18xf32>
    %c0_22 = arith.constant 0 : index
    %c0_23 = arith.constant 0 : index
    %c127 = arith.constant 127 : index
    %16 = vector.load %arg7[%c0_22, %c0_23, %c127] : memref<2x8x256xf32, #tpu.memory_space<vmem>>, vector<2x8x18xf32>
    %c1 = arith.constant 1 : index
    %c0_24 = arith.constant 0 : index
    %c0_25 = arith.constant 0 : index
    %17 = vector.load %arg1[%c1, %c0_24, %c0_25] : memref<14x8x8xf32, #tpu.memory_space<vmem>>, vector<1x8x8xf32>
    %18 = vector.shape_cast %17 : vector<1x8x8xf32> to vector<8x8xf32>
    %19 = vector.shape_cast %18 : vector<8x8xf32> to vector<1x8x8xf32>
    %20 = vector.shape_cast %19 : vector<1x8x8xf32> to vector<1x8x8xf32>
    %21 = vector.broadcast %20 : vector<1x8x8xf32> to vector<2x8x8xf32>
    %cst_26 = arith.constant dense<0.000000e+00> : vector<2x8x18xf32>
    %22 = tpu.matmul %21, %16, %cst_26 {dimension_numbers = #tpu.dot_dimension_numbers<[2], [1], [1], [2], [0, 0, 0, 1, 1, 2], [0], [0]>} : vector<2x8x8xf32>, vector<2x8x18xf32>, vector<2x8x18xf32> -> vector<2x8x18xf32>
    %23 = arith.addf %15, %22 : vector<2x8x18xf32>
    %cst_27 = arith.constant dense<0.000000e+00> : vector<2x8xf32>
    %24 = vector.multi_reduction <add>, %23, %cst_27 [2] : vector<2x8x18xf32> to vector<2x8xf32>
    %25 = vector.shape_cast %24 : vector<2x8xf32> to vector<2x8x1xf32>
    %cst_28 = arith.constant dense<0.000000e+00> : vector<8x1xf32>
    %26 = vector.multi_reduction <add>, %25, %cst_28 [0] : vector<2x8x1xf32> to vector<8x1xf32>
    %27 = vector.shape_cast %26 : vector<8x1xf32> to vector<1x8x1xf32>
    %cst_29 = arith.constant 3.600000e+01 : f32
    %28 = vector.broadcast %cst_29 : f32 to vector<1x8x1xf32>
    %29 = arith.divf %27, %28 : vector<1x8x1xf32>
    %30 = vector.broadcast %29 : vector<1x8x1xf32> to vector<2x8x18xf32>
    %31 = arith.subf %23, %30 : vector<2x8x18xf32>
    %32 = arith.mulf %31, %31 : vector<2x8x18xf32>
    %cst_30 = arith.constant dense<0.000000e+00> : vector<2x8xf32>
    %33 = vector.multi_reduction <add>, %32, %cst_30 [2] : vector<2x8x18xf32> to vector<2x8xf32>
    %34 = vector.shape_cast %33 : vector<2x8xf32> to vector<2x8x1xf32>
    %cst_31 = arith.constant dense<0.000000e+00> : vector<8x1xf32>
    %35 = vector.multi_reduction <add>, %34, %cst_31 [0] : vector<2x8x1xf32> to vector<8x1xf32>
    %36 = vector.shape_cast %35 : vector<8x1xf32> to vector<1x8x1xf32>
    %cst_32 = arith.constant 3.600000e+01 : f32
    %37 = vector.broadcast %cst_32 : f32 to vector<1x8x1xf32>
    %38 = arith.divf %36, %37 : vector<1x8x1xf32>
    %cst_33 = arith.constant 9.99999974E-6 : f32
    %39 = vector.broadcast %cst_33 : f32 to vector<1x8x1xf32>
    %40 = arith.addf %38, %39 : vector<1x8x1xf32>
    %41 = math.rsqrt %40 : vector<1x8x1xf32>
    %42 = vector.broadcast %41 : vector<1x8x1xf32> to vector<2x8x18xf32>
    %43 = arith.mulf %31, %42 : vector<2x8x18xf32>
    %44 = vector.extract_strided_slice %8 {offsets = [0, 0, 0], sizes = [1, 8, 1], strides = [1, 1, 1]} : vector<14x8x1xf32> to vector<1x8x1xf32>
    %45 = vector.broadcast %44 : vector<1x8x1xf32> to vector<2x8x18xf32>
    %46 = arith.mulf %43, %45 : vector<2x8x18xf32>
    %47 = vector.extract_strided_slice %8 {offsets = [1, 0, 0], sizes = [1, 8, 1], strides = [1, 1, 1]} : vector<14x8x1xf32> to vector<1x8x1xf32>
    %48 = vector.broadcast %47 : vector<1x8x1xf32> to vector<2x8x18xf32>
    %49 = arith.addf %46, %48 : vector<2x8x18xf32>
    %cst_34 = arith.constant 5.000000e-01 : f32
    %50 = vector.broadcast %cst_34 : f32 to vector<2x8x18xf32>
    %51 = arith.mulf %50, %49 : vector<2x8x18xf32>
    %52 = math.tanh %51 : vector<2x8x18xf32>
    %cst_35 = arith.constant 1.000000e+00 : f32
    %53 = vector.broadcast %cst_35 : f32 to vector<2x8x18xf32>
    %54 = arith.addf %53, %52 : vector<2x8x18xf32>
    %55 = arith.mulf %52, %54 : vector<2x8x18xf32>
    %56 = arith.mulf %52, %52 : vector<2x8x18xf32>
    %cst_36 = arith.constant 1.000000e+00 : f32
    %57 = vector.broadcast %cst_36 : f32 to vector<2x8x18xf32>
    %58 = arith.addf %57, %56 : vector<2x8x18xf32>
    %59 = arith.divf %55, %58 : vector<2x8x18xf32>
    %c0_37 = arith.constant 0 : index
    %c0_38 = arith.constant 0 : index
    %c0_39 = arith.constant 0 : index
    %60 = vector.load %arg8[%c0_37, %c0_38, %c0_39] : memref<2x8x18xf32, #tpu.memory_space<vmem>>, vector<2x8x18xf32>
    tpu.vector_store %arg8[%c0_37, %c0_38, %c0_39], %59 {strides = array<i32>} : memref<2x8x18xf32, #tpu.memory_space<vmem>>, vector<2x8x18xf32>,
    %c0_40 = arith.constant 0 : index
    %c0_41 = arith.constant 0 : index
    %c128_42 = arith.constant 128 : index
    %61 = vector.load %arg7[%c0_40, %c0_41, %c128_42] : memref<2x8x256xf32, #tpu.memory_space<vmem>>, vector<2x8x18xf32>
    tpu.vector_store %arg7[%c0_40, %c0_41, %c128_42], %59 {strides = array<i32>} : memref<2x8x256xf32, #tpu.memory_space<vmem>>, vector<2x8x18xf32>,
    %c0_43 = arith.constant 0 : index
    %c0_44 = arith.constant 0 : index
    %c124 = arith.constant 124 : index
    %62 = vector.load %arg7[%c0_43, %c0_44, %c124] : memref<2x8x256xf32, #tpu.memory_space<vmem>>, vector<2x8x22xf32>
    %c2 = arith.constant 2 : index
    %c0_45 = arith.constant 0 : index
    %c0_46 = arith.constant 0 : index
    %63 = vector.load %arg1[%c2, %c0_45, %c0_46] : memref<14x8x8xf32, #tpu.memory_space<vmem>>, vector<1x8x8xf32>
    %64 = vector.shape_cast %63 : vector<1x8x8xf32> to vector<8x8xf32>
    %65 = vector.shape_cast %64 : vector<8x8xf32> to vector<1x8x8xf32>
    %66 = vector.shape_cast %65 : vector<1x8x8xf32> to vector<1x8x8xf32>
    %67 = vector.broadcast %66 : vector<1x8x8xf32> to vector<2x8x8xf32>
    %cst_47 = arith.constant dense<0.000000e+00> : vector<2x8x22xf32>
    %68 = tpu.matmul %67, %62, %cst_47 {dimension_numbers = #tpu.dot_dimension_numbers<[2], [1], [1], [2], [0, 0, 0, 1, 1, 2], [0], [0]>} : vector<2x8x8xf32>, vector<2x8x22xf32>, vector<2x8x22xf32> -> vector<2x8x22xf32>
    %c0_48 = arith.constant 0 : index
    %c0_49 = arith.constant 0 : index
    %c126_50 = arith.constant 126 : index
    %69 = vector.load %arg7[%c0_48, %c0_49, %c126_50] : memref<2x8x256xf32, #tpu.memory_space<vmem>>, vector<2x8x22xf32>
    %c3 = arith.constant 3 : index
    %c0_51 = arith.constant 0 : index
    %c0_52 = arith.constant 0 : index
    %70 = vector.load %arg1[%c3, %c0_51, %c0_52] : memref<14x8x8xf32, #tpu.memory_space<vmem>>, vector<1x8x8xf32>
    %71 = vector.shape_cast %70 : vector<1x8x8xf32> to vector<8x8xf32>
    %72 = vector.shape_cast %71 : vector<8x8xf32> to vector<1x8x8xf32>
    %73 = vector.shape_cast %72 : vector<1x8x8xf32> to vector<1x8x8xf32>
    %74 = vector.broadcast %73 : vector<1x8x8xf32> to vector<2x8x8xf32>
    %cst_53 = arith.constant dense<0.000000e+00> : vector<2x8x22xf32>
    %75 = tpu.matmul %74, %69, %cst_53 {dimension_numbers = #tpu.dot_dimension_numbers<[2], [1], [1], [2], [0, 0, 0, 1, 1, 2], [0], [0]>} : vector<2x8x8xf32>, vector<2x8x22xf32>, vector<2x8x22xf32> -> vector<2x8x22xf32>
    %76 = arith.addf %68, %75 : vector<2x8x22xf32>
    %cst_54 = arith.constant dense<0.000000e+00> : vector<2x8xf32>
    %77 = vector.multi_reduction <add>, %76, %cst_54 [2] : vector<2x8x22xf32> to vector<2x8xf32>
    %78 = vector.shape_cast %77 : vector<2x8xf32> to vector<2x8x1xf32>
    %cst_55 = arith.constant dense<0.000000e+00> : vector<8x1xf32>
    %79 = vector.multi_reduction <add>, %78, %cst_55 [0] : vector<2x8x1xf32> to vector<8x1xf32>
    %80 = vector.shape_cast %79 : vector<8x1xf32> to vector<1x8x1xf32>
    %cst_56 = arith.constant 4.400000e+01 : f32
    %81 = vector.broadcast %cst_56 : f32 to vector<1x8x1xf32>
    %82 = arith.divf %80, %81 : vector<1x8x1xf32>
    %83 = vector.broadcast %82 : vector<1x8x1xf32> to vector<2x8x22xf32>
    %84 = arith.subf %76, %83 : vector<2x8x22xf32>
    %85 = arith.mulf %84, %84 : vector<2x8x22xf32>
    %cst_57 = arith.constant dense<0.000000e+00> : vector<2x8xf32>
    %86 = vector.multi_reduction <add>, %85, %cst_57 [2] : vector<2x8x22xf32> to vector<2x8xf32>
    %87 = vector.shape_cast %86 : vector<2x8xf32> to vector<2x8x1xf32>
    %cst_58 = arith.constant dense<0.000000e+00> : vector<8x1xf32>
    %88 = vector.multi_reduction <add>, %87, %cst_58 [0] : vector<2x8x1xf32> to vector<8x1xf32>
    %89 = vector.shape_cast %88 : vector<8x1xf32> to vector<1x8x1xf32>
    %cst_59 = arith.constant 4.400000e+01 : f32
    %90 = vector.broadcast %cst_59 : f32 to vector<1x8x1xf32>
    %91 = arith.divf %89, %90 : vector<1x8x1xf32>
    %cst_60 = arith.constant 9.99999974E-6 : f32
    %92 = vector.broadcast %cst_60 : f32 to vector<1x8x1xf32>
    %93 = arith.addf %91, %92 : vector<1x8x1xf32>
    %94 = math.rsqrt %93 : vector<1x8x1xf32>
    %95 = vector.broadcast %94 : vector<1x8x1xf32> to vector<2x8x22xf32>
    %96 = arith.mulf %84, %95 : vector<2x8x22xf32>
    %97 = vector.extract_strided_slice %8 {offsets = [2, 0, 0], sizes = [1, 8, 1], strides = [1, 1, 1]} : vector<14x8x1xf32> to vector<1x8x1xf32>
    %98 = vector.broadcast %97 : vector<1x8x1xf32> to vector<2x8x22xf32>
    %99 = arith.mulf %96, %98 : vector<2x8x22xf32>
    %100 = vector.extract_strided_slice %8 {offsets = [3, 0, 0], sizes = [1, 8, 1], strides = [1, 1, 1]} : vector<14x8x1xf32> to vector<1x8x1xf32>
    %101 = vector.broadcast %100 : vector<1x8x1xf32> to vector<2x8x22xf32>
    %102 = arith.addf %99, %101 : vector<2x8x22xf32>
    %cst_61 = arith.constant 5.000000e-01 : f32
    %103 = vector.broadcast %cst_61 : f32 to vector<2x8x22xf32>
    %104 = arith.mulf %103, %102 : vector<2x8x22xf32>
    %105 = math.tanh %104 : vector<2x8x22xf32>
    %cst_62 = arith.constant 1.000000e+00 : f32
    %106 = vector.broadcast %cst_62 : f32 to vector<2x8x22xf32>
    %107 = arith.addf %106, %105 : vector<2x8x22xf32>
    %108 = arith.mulf %105, %107 : vector<2x8x22xf32>
    %109 = arith.mulf %105, %105 : vector<2x8x22xf32>
    %cst_63 = arith.constant 1.000000e+00 : f32
    %110 = vector.broadcast %cst_63 : f32 to vector<2x8x22xf32>
    %111 = arith.addf %110, %109 : vector<2x8x22xf32>
    %112 = arith.divf %108, %111 : vector<2x8x22xf32>
    %c0_64 = arith.constant 0 : index
    %c0_65 = arith.constant 0 : index
    %c0_66 = arith.constant 0 : index
    %113 = vector.load %arg8[%c0_64, %c0_65, %c0_66] : memref<2x8x18xf32, #tpu.memory_space<vmem>>, vector<2x8x18xf32>
    %114 = vector.extract_strided_slice %112 {offsets = [0, 0, 4], sizes = [2, 8, 18], strides = [1, 1, 1]} : vector<2x8x22xf32> to vector<2x8x18xf32>
    %115 = arith.addf %113, %114 : vector<2x8x18xf32>
    %c0_67 = arith.constant 0 : index
    %c0_68 = arith.constant 0 : index
    %c0_69 = arith.constant 0 : index
    %116 = vector.load %arg8[%c0_67, %c0_68, %c0_69] : memref<2x8x18xf32, #tpu.memory_space<vmem>>, vector<2x8x18xf32>
    tpu.vector_store %arg8[%c0_67, %c0_68, %c0_69], %115 {strides = array<i32>} : memref<2x8x18xf32, #tpu.memory_space<vmem>>, vector<2x8x18xf32>,
    %c0_70 = arith.constant 0 : index
    %c0_71 = arith.constant 0 : index
    %c128_72 = arith.constant 128 : index
    %117 = vector.load %arg7[%c0_70, %c0_71, %c128_72] : memref<2x8x256xf32, #tpu.memory_space<vmem>>, vector<2x8x18xf32>
    %118 = vector.extract_strided_slice %112 {offsets = [0, 0, 0], sizes = [2, 8, 18], strides = [1, 1, 1]} : vector<2x8x22xf32> to vector<2x8x18xf32>
    %119 = arith.addf %117, %118 : vector<2x8x18xf32>
    %c0_73 = arith.constant 0 : index
    %c0_74 = arith.constant 0 : index
    %c128_75 = arith.constant 128 : index
    %120 = vector.load %arg7[%c0_73, %c0_74, %c128_75] : memref<2x8x256xf32, #tpu.memory_space<vmem>>, vector<2x8x18xf32>
    tpu.vector_store %arg7[%c0_73, %c0_74, %c128_75], %119 {strides = array<i32>} : memref<2x8x256xf32, #tpu.memory_space<vmem>>, vector<2x8x18xf32>,
    %c0_76 = arith.constant 0 : index
    %c0_77 = arith.constant 0 : index
    %c120 = arith.constant 120 : index
    %121 = vector.load %arg7[%c0_76, %c0_77, %c120] : memref<2x8x256xf32, #tpu.memory_space<vmem>>, vector<2x8x26xf32>
    %c4_78 = arith.constant 4 : index
    %c0_79 = arith.constant 0 : index
    %c0_80 = arith.constant 0 : index
    %122 = vector.load %arg1[%c4_78, %c0_79, %c0_80] : memref<14x8x8xf32, #tpu.memory_space<vmem>>, vector<1x8x8xf32>
    %123 = vector.shape_cast %122 : vector<1x8x8xf32> to vector<8x8xf32>
    %124 = vector.shape_cast %123 : vector<8x8xf32> to vector<1x8x8xf32>
    %125 = vector.shape_cast %124 : vector<1x8x8xf32> to vector<1x8x8xf32>
    %126 = vector.broadcast %125 : vector<1x8x8xf32> to vector<2x8x8xf32>
    %cst_81 = arith.constant dense<0.000000e+00> : vector<2x8x26xf32>
    %127 = tpu.matmul %126, %121, %cst_81 {dimension_numbers = #tpu.dot_dimension_numbers<[2], [1], [1], [2], [0, 0, 0, 1, 1, 2], [0], [0]>} : vector<2x8x8xf32>, vector<2x8x26xf32>, vector<2x8x26xf32> -> vector<2x8x26xf32>
    %c0_82 = arith.constant 0 : index
    %c0_83 = arith.constant 0 : index
    %c124_84 = arith.constant 124 : index
    %128 = vector.load %arg7[%c0_82, %c0_83, %c124_84] : memref<2x8x256xf32, #tpu.memory_space<vmem>>, vector<2x8x26xf32>
    %c5 = arith.constant 5 : index
    %c0_85 = arith.constant 0 : index
    %c0_86 = arith.constant 0 : index
    %129 = vector.load %arg1[%c5, %c0_85, %c0_86] : memref<14x8x8xf32, #tpu.memory_space<vmem>>, vector<1x8x8xf32>
    %130 = vector.shape_cast %129 : vector<1x8x8xf32> to vector<8x8xf32>
    %131 = vector.shape_cast %130 : vector<8x8xf32> to vector<1x8x8xf32>
    %132 = vector.shape_cast %131 : vector<1x8x8xf32> to vector<1x8x8xf32>
    %133 = vector.broadcast %132 : vector<1x8x8xf32> to vector<2x8x8xf32>
    %cst_87 = arith.constant dense<0.000000e+00> : vector<2x8x26xf32>
    %134 = tpu.matmul %133, %128, %cst_87 {dimension_numbers = #tpu.dot_dimension_numbers<[2], [1], [1], [2], [0, 0, 0, 1, 1, 2], [0], [0]>} : vector<2x8x8xf32>, vector<2x8x26xf32>, vector<2x8x26xf32> -> vector<2x8x26xf32>
    %135 = arith.addf %127, %134 : vector<2x8x26xf32>
    %cst_88 = arith.constant dense<0.000000e+00> : vector<2x8xf32>
    %136 = vector.multi_reduction <add>, %135, %cst_88 [2] : vector<2x8x26xf32> to vector<2x8xf32>
    %137 = vector.shape_cast %136 : vector<2x8xf32> to vector<2x8x1xf32>
    %cst_89 = arith.constant dense<0.000000e+00> : vector<8x1xf32>
    %138 = vector.multi_reduction <add>, %137, %cst_89 [0] : vector<2x8x1xf32> to vector<8x1xf32>
    %139 = vector.shape_cast %138 : vector<8x1xf32> to vector<1x8x1xf32>
    %cst_90 = arith.constant 5.200000e+01 : f32
    %140 = vector.broadcast %cst_90 : f32 to vector<1x8x1xf32>
    %141 = arith.divf %139, %140 : vector<1x8x1xf32>
    %142 = vector.broadcast %141 : vector<1x8x1xf32> to vector<2x8x26xf32>
    %143 = arith.subf %135, %142 : vector<2x8x26xf32>
    %144 = arith.mulf %143, %143 : vector<2x8x26xf32>
    %cst_91 = arith.constant dense<0.000000e+00> : vector<2x8xf32>
    %145 = vector.multi_reduction <add>, %144, %cst_91 [2] : vector<2x8x26xf32> to vector<2x8xf32>
    %146 = vector.shape_cast %145 : vector<2x8xf32> to vector<2x8x1xf32>
    %cst_92 = arith.constant dense<0.000000e+00> : vector<8x1xf32>
    %147 = vector.multi_reduction <add>, %146, %cst_92 [0] : vector<2x8x1xf32> to vector<8x1xf32>
    %148 = vector.shape_cast %147 : vector<8x1xf32> to vector<1x8x1xf32>
    %cst_93 = arith.constant 5.200000e+01 : f32
    %149 = vector.broadcast %cst_93 : f32 to vector<1x8x1xf32>
    %150 = arith.divf %148, %149 : vector<1x8x1xf32>
    %cst_94 = arith.constant 9.99999974E-6 : f32
    %151 = vector.broadcast %cst_94 : f32 to vector<1x8x1xf32>
    %152 = arith.addf %150, %151 : vector<1x8x1xf32>
    %153 = math.rsqrt %152 : vector<1x8x1xf32>
    %154 = vector.broadcast %153 : vector<1x8x1xf32> to vector<2x8x26xf32>
    %155 = arith.mulf %143, %154 : vector<2x8x26xf32>
    %156 = vector.extract_strided_slice %8 {offsets = [4, 0, 0], sizes = [1, 8, 1], strides = [1, 1, 1]} : vector<14x8x1xf32> to vector<1x8x1xf32>
    %157 = vector.broadcast %156 : vector<1x8x1xf32> to vector<2x8x26xf32>
    %158 = arith.mulf %155, %157 : vector<2x8x26xf32>
    %159 = vector.extract_strided_slice %8 {offsets = [5, 0, 0], sizes = [1, 8, 1], strides = [1, 1, 1]} : vector<14x8x1xf32> to vector<1x8x1xf32>
    %160 = vector.broadcast %159 : vector<1x8x1xf32> to vector<2x8x26xf32>
    %161 = arith.addf %158, %160 : vector<2x8x26xf32>
    %cst_95 = arith.constant 5.000000e-01 : f32
    %162 = vector.broadcast %cst_95 : f32 to vector<2x8x26xf32>
    %163 = arith.mulf %162, %161 : vector<2x8x26xf32>
    %164 = math.tanh %163 : vector<2x8x26xf32>
    %cst_96 = arith.constant 1.000000e+00 : f32
    %165 = vector.broadcast %cst_96 : f32 to vector<2x8x26xf32>
    %166 = arith.addf %165, %164 : vector<2x8x26xf32>
    %167 = arith.mulf %164, %166 : vector<2x8x26xf32>
    %168 = arith.mulf %164, %164 : vector<2x8x26xf32>
    %cst_97 = arith.constant 1.000000e+00 : f32
    %169 = vector.broadcast %cst_97 : f32 to vector<2x8x26xf32>
    %170 = arith.addf %169, %168 : vector<2x8x26xf32>
    %171 = arith.divf %167, %170 : vector<2x8x26xf32>
    %c0_98 = arith.constant 0 : index
    %c0_99 = arith.constant 0 : index
    %c0_100 = arith.constant 0 : index
    %172 = vector.load %arg8[%c0_98, %c0_99, %c0_100] : memref<2x8x18xf32, #tpu.memory_space<vmem>>, vector<2x8x18xf32>
    %173 = vector.extract_strided_slice %171 {offsets = [0, 0, 8], sizes = [2, 8, 18], strides = [1, 1, 1]} : vector<2x8x26xf32> to vector<2x8x18xf32>
    %174 = arith.addf %172, %173 : vector<2x8x18xf32>
    %c0_101 = arith.constant 0 : index
    %c0_102 = arith.constant 0 : index
    %c0_103 = arith.constant 0 : index
    %175 = vector.load %arg8[%c0_101, %c0_102, %c0_103] : memref<2x8x18xf32, #tpu.memory_space<vmem>>, vector<2x8x18xf32>
    tpu.vector_store %arg8[%c0_101, %c0_102, %c0_103], %174 {strides = array<i32>} : memref<2x8x18xf32, #tpu.memory_space<vmem>>, vector<2x8x18xf32>,
    %c0_104 = arith.constant 0 : index
    %c0_105 = arith.constant 0 : index
    %c128_106 = arith.constant 128 : index
    %176 = vector.load %arg7[%c0_104, %c0_105, %c128_106] : memref<2x8x256xf32, #tpu.memory_space<vmem>>, vector<2x8x18xf32>
    %177 = vector.extract_strided_slice %171 {offsets = [0, 0, 0], sizes = [2, 8, 18], strides = [1, 1, 1]} : vector<2x8x26xf32> to vector<2x8x18xf32>
    %178 = arith.addf %176, %177 : vector<2x8x18xf32>
    %c0_107 = arith.constant 0 : index
    %c0_108 = arith.constant 0 : index
    %c128_109 = arith.constant 128 : index
    %179 = vector.load %arg7[%c0_107, %c0_108, %c128_109] : memref<2x8x256xf32, #tpu.memory_space<vmem>>, vector<2x8x18xf32>
    tpu.vector_store %arg7[%c0_107, %c0_108, %c128_109], %178 {strides = array<i32>} : memref<2x8x256xf32, #tpu.memory_space<vmem>>, vector<2x8x18xf32>,
    %c0_110 = arith.constant 0 : index
    %c0_111 = arith.constant 0 : index
    %c112 = arith.constant 112 : index
    %180 = vector.load %arg7[%c0_110, %c0_111, %c112] : memref<2x8x256xf32, #tpu.memory_space<vmem>>, vector<2x8x34xf32>
    %c6 = arith.constant 6 : index
    %c0_112 = arith.constant 0 : index
    %c0_113 = arith.constant 0 : index
    %181 = vector.load %arg1[%c6, %c0_112, %c0_113] : memref<14x8x8xf32, #tpu.memory_space<vmem>>, vector<1x8x8xf32>
    %182 = vector.shape_cast %181 : vector<1x8x8xf32> to vector<8x8xf32>
    %183 = vector.shape_cast %182 : vector<8x8xf32> to vector<1x8x8xf32>
    %184 = vector.shape_cast %183 : vector<1x8x8xf32> to vector<1x8x8xf32>
    %185 = vector.broadcast %184 : vector<1x8x8xf32> to vector<2x8x8xf32>
    %cst_114 = arith.constant dense<0.000000e+00> : vector<2x8x34xf32>
    %186 = tpu.matmul %185, %180, %cst_114 {dimension_numbers = #tpu.dot_dimension_numbers<[2], [1], [1], [2], [0, 0, 0, 1, 1, 2], [0], [0]>} : vector<2x8x8xf32>, vector<2x8x34xf32>, vector<2x8x34xf32> -> vector<2x8x34xf32>
    %c0_115 = arith.constant 0 : index
    %c0_116 = arith.constant 0 : index
    %c120_117 = arith.constant 120 : index
    %187 = vector.load %arg7[%c0_115, %c0_116, %c120_117] : memref<2x8x256xf32, #tpu.memory_space<vmem>>, vector<2x8x34xf32>
    %c7 = arith.constant 7 : index
    %c0_118 = arith.constant 0 : index
    %c0_119 = arith.constant 0 : index
    %188 = vector.load %arg1[%c7, %c0_118, %c0_119] : memref<14x8x8xf32, #tpu.memory_space<vmem>>, vector<1x8x8xf32>
    %189 = vector.shape_cast %188 : vector<1x8x8xf32> to vector<8x8xf32>
    %190 = vector.shape_cast %189 : vector<8x8xf32> to vector<1x8x8xf32>
    %191 = vector.shape_cast %190 : vector<1x8x8xf32> to vector<1x8x8xf32>
    %192 = vector.broadcast %191 : vector<1x8x8xf32> to vector<2x8x8xf32>
    %cst_120 = arith.constant dense<0.000000e+00> : vector<2x8x34xf32>
    %193 = tpu.matmul %192, %187, %cst_120 {dimension_numbers = #tpu.dot_dimension_numbers<[2], [1], [1], [2], [0, 0, 0, 1, 1, 2], [0], [0]>} : vector<2x8x8xf32>, vector<2x8x34xf32>, vector<2x8x34xf32> -> vector<2x8x34xf32>
    %194 = arith.addf %186, %193 : vector<2x8x34xf32>
    %cst_121 = arith.constant dense<0.000000e+00> : vector<2x8xf32>
    %195 = vector.multi_reduction <add>, %194, %cst_121 [2] : vector<2x8x34xf32> to vector<2x8xf32>
    %196 = vector.shape_cast %195 : vector<2x8xf32> to vector<2x8x1xf32>
    %cst_122 = arith.constant dense<0.000000e+00> : vector<8x1xf32>
    %197 = vector.multi_reduction <add>, %196, %cst_122 [0] : vector<2x8x1xf32> to vector<8x1xf32>
    %198 = vector.shape_cast %197 : vector<8x1xf32> to vector<1x8x1xf32>
    %cst_123 = arith.constant 6.800000e+01 : f32
    %199 = vector.broadcast %cst_123 : f32 to vector<1x8x1xf32>
    %200 = arith.divf %198, %199 : vector<1x8x1xf32>
    %201 = vector.broadcast %200 : vector<1x8x1xf32> to vector<2x8x34xf32>
    %202 = arith.subf %194, %201 : vector<2x8x34xf32>
    %203 = arith.mulf %202, %202 : vector<2x8x34xf32>
    %cst_124 = arith.constant dense<0.000000e+00> : vector<2x8xf32>
    %204 = vector.multi_reduction <add>, %203, %cst_124 [2] : vector<2x8x34xf32> to vector<2x8xf32>
    %205 = vector.shape_cast %204 : vector<2x8xf32> to vector<2x8x1xf32>
    %cst_125 = arith.constant dense<0.000000e+00> : vector<8x1xf32>
    %206 = vector.multi_reduction <add>, %205, %cst_125 [0] : vector<2x8x1xf32> to vector<8x1xf32>
    %207 = vector.shape_cast %206 : vector<8x1xf32> to vector<1x8x1xf32>
    %cst_126 = arith.constant 6.800000e+01 : f32
    %208 = vector.broadcast %cst_126 : f32 to vector<1x8x1xf32>
    %209 = arith.divf %207, %208 : vector<1x8x1xf32>
    %cst_127 = arith.constant 9.99999974E-6 : f32
    %210 = vector.broadcast %cst_127 : f32 to vector<1x8x1xf32>
    %211 = arith.addf %209, %210 : vector<1x8x1xf32>
    %212 = math.rsqrt %211 : vector<1x8x1xf32>
    %213 = vector.broadcast %212 : vector<1x8x1xf32> to vector<2x8x34xf32>
    %214 = arith.mulf %202, %213 : vector<2x8x34xf32>
    %215 = vector.extract_strided_slice %8 {offsets = [6, 0, 0], sizes = [1, 8, 1], strides = [1, 1, 1]} : vector<14x8x1xf32> to vector<1x8x1xf32>
    %216 = vector.broadcast %215 : vector<1x8x1xf32> to vector<2x8x34xf32>
    %217 = arith.mulf %214, %216 : vector<2x8x34xf32>
    %218 = vector.extract_strided_slice %8 {offsets = [7, 0, 0], sizes = [1, 8, 1], strides = [1, 1, 1]} : vector<14x8x1xf32> to vector<1x8x1xf32>
    %219 = vector.broadcast %218 : vector<1x8x1xf32> to vector<2x8x34xf32>
    %220 = arith.addf %217, %219 : vector<2x8x34xf32>
    %cst_128 = arith.constant 5.000000e-01 : f32
    %221 = vector.broadcast %cst_128 : f32 to vector<2x8x34xf32>
    %222 = arith.mulf %221, %220 : vector<2x8x34xf32>
    %223 = math.tanh %222 : vector<2x8x34xf32>
    %cst_129 = arith.constant 1.000000e+00 : f32
    %224 = vector.broadcast %cst_129 : f32 to vector<2x8x34xf32>
    %225 = arith.addf %224, %223 : vector<2x8x34xf32>
    %226 = arith.mulf %223, %225 : vector<2x8x34xf32>
    %227 = arith.mulf %223, %223 : vector<2x8x34xf32>
    %cst_130 = arith.constant 1.000000e+00 : f32
    %228 = vector.broadcast %cst_130 : f32 to vector<2x8x34xf32>
    %229 = arith.addf %228, %227 : vector<2x8x34xf32>
    %230 = arith.divf %226, %229 : vector<2x8x34xf32>
    %c0_131 = arith.constant 0 : index
    %c0_132 = arith.constant 0 : index
    %c0_133 = arith.constant 0 : index
    %231 = vector.load %arg8[%c0_131, %c0_132, %c0_133] : memref<2x8x18xf32, #tpu.memory_space<vmem>>, vector<2x8x18xf32>
    %232 = vector.extract_strided_slice %230 {offsets = [0, 0, 16], sizes = [2, 8, 18], strides = [1, 1, 1]} : vector<2x8x34xf32> to vector<2x8x18xf32>
    %233 = arith.addf %231, %232 : vector<2x8x18xf32>
    %c0_134 = arith.constant 0 : index
    %c0_135 = arith.constant 0 : index
    %c0_136 = arith.constant 0 : index
    %234 = vector.load %arg8[%c0_134, %c0_135, %c0_136] : memref<2x8x18xf32, #tpu.memory_space<vmem>>, vector<2x8x18xf32>
    tpu.vector_store %arg8[%c0_134, %c0_135, %c0_136], %233 {strides = array<i32>} : memref<2x8x18xf32, #tpu.memory_space<vmem>>, vector<2x8x18xf32>,
    %c0_137 = arith.constant 0 : index
    %c0_138 = arith.constant 0 : index
    %c128_139 = arith.constant 128 : index
    %235 = vector.load %arg7[%c0_137, %c0_138, %c128_139] : memref<2x8x256xf32, #tpu.memory_space<vmem>>, vector<2x8x18xf32>
    %236 = vector.extract_strided_slice %230 {offsets = [0, 0, 0], sizes = [2, 8, 18], strides = [1, 1, 1]} : vector<2x8x34xf32> to vector<2x8x18xf32>
    %237 = arith.addf %235, %236 : vector<2x8x18xf32>
    %c0_140 = arith.constant 0 : index
    %c0_141 = arith.constant 0 : index
    %c128_142 = arith.constant 128 : index
    %238 = vector.load %arg7[%c0_140, %c0_141, %c128_142] : memref<2x8x256xf32, #tpu.memory_space<vmem>>, vector<2x8x18xf32>
    tpu.vector_store %arg7[%c0_140, %c0_141, %c128_142], %237 {strides = array<i32>} : memref<2x8x256xf32, #tpu.memory_space<vmem>>, vector<2x8x18xf32>,
    %c0_143 = arith.constant 0 : index
    %c0_144 = arith.constant 0 : index
    %c96 = arith.constant 96 : index
    %239 = vector.load %arg7[%c0_143, %c0_144, %c96] : memref<2x8x256xf32, #tpu.memory_space<vmem>>, vector<2x8x50xf32>
    %c8 = arith.constant 8 : index
    %c0_145 = arith.constant 0 : index
    %c0_146 = arith.constant 0 : index
    %240 = vector.load %arg1[%c8, %c0_145, %c0_146] : memref<14x8x8xf32, #tpu.memory_space<vmem>>, vector<1x8x8xf32>
    %241 = vector.shape_cast %240 : vector<1x8x8xf32> to vector<8x8xf32>
    %242 = vector.shape_cast %241 : vector<8x8xf32> to vector<1x8x8xf32>
    %243 = vector.shape_cast %242 : vector<1x8x8xf32> to vector<1x8x8xf32>
    %244 = vector.broadcast %243 : vector<1x8x8xf32> to vector<2x8x8xf32>
    %cst_147 = arith.constant dense<0.000000e+00> : vector<2x8x50xf32>
    %245 = tpu.matmul %244, %239, %cst_147 {dimension_numbers = #tpu.dot_dimension_numbers<[2], [1], [1], [2], [0, 0, 0, 1, 1, 2], [0], [0]>} : vector<2x8x8xf32>, vector<2x8x50xf32>, vector<2x8x50xf32> -> vector<2x8x50xf32>
    %c0_148 = arith.constant 0 : index
    %c0_149 = arith.constant 0 : index
    %c112_150 = arith.constant 112 : index
    %246 = vector.load %arg7[%c0_148, %c0_149, %c112_150] : memref<2x8x256xf32, #tpu.memory_space<vmem>>, vector<2x8x50xf32>
    %c9 = arith.constant 9 : index
    %c0_151 = arith.constant 0 : index
    %c0_152 = arith.constant 0 : index
    %247 = vector.load %arg1[%c9, %c0_151, %c0_152] : memref<14x8x8xf32, #tpu.memory_space<vmem>>, vector<1x8x8xf32>
    %248 = vector.shape_cast %247 : vector<1x8x8xf32> to vector<8x8xf32>
    %249 = vector.shape_cast %248 : vector<8x8xf32> to vector<1x8x8xf32>
    %250 = vector.shape_cast %249 : vector<1x8x8xf32> to vector<1x8x8xf32>
    %251 = vector.broadcast %250 : vector<1x8x8xf32> to vector<2x8x8xf32>
    %cst_153 = arith.constant dense<0.000000e+00> : vector<2x8x50xf32>
    %252 = tpu.matmul %251, %246, %cst_153 {dimension_numbers = #tpu.dot_dimension_numbers<[2], [1], [1], [2], [0, 0, 0, 1, 1, 2], [0], [0]>} : vector<2x8x8xf32>, vector<2x8x50xf32>, vector<2x8x50xf32> -> vector<2x8x50xf32>
    %253 = arith.addf %245, %252 : vector<2x8x50xf32>
    %cst_154 = arith.constant dense<0.000000e+00> : vector<2x8xf32>
    %254 = vector.multi_reduction <add>, %253, %cst_154 [2] : vector<2x8x50xf32> to vector<2x8xf32>
    %255 = vector.shape_cast %254 : vector<2x8xf32> to vector<2x8x1xf32>
    %cst_155 = arith.constant dense<0.000000e+00> : vector<8x1xf32>
    %256 = vector.multi_reduction <add>, %255, %cst_155 [0] : vector<2x8x1xf32> to vector<8x1xf32>
    %257 = vector.shape_cast %256 : vector<8x1xf32> to vector<1x8x1xf32>
    %cst_156 = arith.constant 1.000000e+02 : f32
    %258 = vector.broadcast %cst_156 : f32 to vector<1x8x1xf32>
    %259 = arith.divf %257, %258 : vector<1x8x1xf32>
    %260 = vector.broadcast %259 : vector<1x8x1xf32> to vector<2x8x50xf32>
    %261 = arith.subf %253, %260 : vector<2x8x50xf32>
    %262 = arith.mulf %261, %261 : vector<2x8x50xf32>
    %cst_157 = arith.constant dense<0.000000e+00> : vector<2x8xf32>
    %263 = vector.multi_reduction <add>, %262, %cst_157 [2] : vector<2x8x50xf32> to vector<2x8xf32>
    %264 = vector.shape_cast %263 : vector<2x8xf32> to vector<2x8x1xf32>
    %cst_158 = arith.constant dense<0.000000e+00> : vector<8x1xf32>
    %265 = vector.multi_reduction <add>, %264, %cst_158 [0] : vector<2x8x1xf32> to vector<8x1xf32>
    %266 = vector.shape_cast %265 : vector<8x1xf32> to vector<1x8x1xf32>
    %cst_159 = arith.constant 1.000000e+02 : f32
    %267 = vector.broadcast %cst_159 : f32 to vector<1x8x1xf32>
    %268 = arith.divf %266, %267 : vector<1x8x1xf32>
    %cst_160 = arith.constant 9.99999974E-6 : f32
    %269 = vector.broadcast %cst_160 : f32 to vector<1x8x1xf32>
    %270 = arith.addf %268, %269 : vector<1x8x1xf32>
    %271 = math.rsqrt %270 : vector<1x8x1xf32>
    %272 = vector.broadcast %271 : vector<1x8x1xf32> to vector<2x8x50xf32>
    %273 = arith.mulf %261, %272 : vector<2x8x50xf32>
    %274 = vector.extract_strided_slice %8 {offsets = [8, 0, 0], sizes = [1, 8, 1], strides = [1, 1, 1]} : vector<14x8x1xf32> to vector<1x8x1xf32>
    %275 = vector.broadcast %274 : vector<1x8x1xf32> to vector<2x8x50xf32>
    %276 = arith.mulf %273, %275 : vector<2x8x50xf32>
    %277 = vector.extract_strided_slice %8 {offsets = [9, 0, 0], sizes = [1, 8, 1], strides = [1, 1, 1]} : vector<14x8x1xf32> to vector<1x8x1xf32>
    %278 = vector.broadcast %277 : vector<1x8x1xf32> to vector<2x8x50xf32>
    %279 = arith.addf %276, %278 : vector<2x8x50xf32>
    %cst_161 = arith.constant 5.000000e-01 : f32
    %280 = vector.broadcast %cst_161 : f32 to vector<2x8x50xf32>
    %281 = arith.mulf %280, %279 : vector<2x8x50xf32>
    %282 = math.tanh %281 : vector<2x8x50xf32>
    %cst_162 = arith.constant 1.000000e+00 : f32
    %283 = vector.broadcast %cst_162 : f32 to vector<2x8x50xf32>
    %284 = arith.addf %283, %282 : vector<2x8x50xf32>
    %285 = arith.mulf %282, %284 : vector<2x8x50xf32>
    %286 = arith.mulf %282, %282 : vector<2x8x50xf32>
    %cst_163 = arith.constant 1.000000e+00 : f32
    %287 = vector.broadcast %cst_163 : f32 to vector<2x8x50xf32>
    %288 = arith.addf %287, %286 : vector<2x8x50xf32>
    %289 = arith.divf %285, %288 : vector<2x8x50xf32>
    %c0_164 = arith.constant 0 : index
    %c0_165 = arith.constant 0 : index
    %c0_166 = arith.constant 0 : index
    %290 = vector.load %arg8[%c0_164, %c0_165, %c0_166] : memref<2x8x18xf32, #tpu.memory_space<vmem>>, vector<2x8x18xf32>
    %291 = vector.extract_strided_slice %289 {offsets = [0, 0, 32], sizes = [2, 8, 18], strides = [1, 1, 1]} : vector<2x8x50xf32> to vector<2x8x18xf32>
    %292 = arith.addf %290, %291 : vector<2x8x18xf32>
    %c0_167 = arith.constant 0 : index
    %c0_168 = arith.constant 0 : index
    %c0_169 = arith.constant 0 : index
    %293 = vector.load %arg8[%c0_167, %c0_168, %c0_169] : memref<2x8x18xf32, #tpu.memory_space<vmem>>, vector<2x8x18xf32>
    tpu.vector_store %arg8[%c0_167, %c0_168, %c0_169], %292 {strides = array<i32>} : memref<2x8x18xf32, #tpu.memory_space<vmem>>, vector<2x8x18xf32>,
    %c0_170 = arith.constant 0 : index
    %c0_171 = arith.constant 0 : index
    %c128_172 = arith.constant 128 : index
    %294 = vector.load %arg7[%c0_170, %c0_171, %c128_172] : memref<2x8x256xf32, #tpu.memory_space<vmem>>, vector<2x8x18xf32>
    %295 = vector.extract_strided_slice %289 {offsets = [0, 0, 0], sizes = [2, 8, 18], strides = [1, 1, 1]} : vector<2x8x50xf32> to vector<2x8x18xf32>
    %296 = arith.addf %294, %295 : vector<2x8x18xf32>
    %c0_173 = arith.constant 0 : index
    %c0_174 = arith.constant 0 : index
    %c128_175 = arith.constant 128 : index
    %297 = vector.load %arg7[%c0_173, %c0_174, %c128_175] : memref<2x8x256xf32, #tpu.memory_space<vmem>>, vector<2x8x18xf32>
    tpu.vector_store %arg7[%c0_173, %c0_174, %c128_175], %296 {strides = array<i32>} : memref<2x8x256xf32, #tpu.memory_space<vmem>>, vector<2x8x18xf32>,
    %c0_176 = arith.constant 0 : index
    %c0_177 = arith.constant 0 : index
    %c64 = arith.constant 64 : index
    %298 = vector.load %arg7[%c0_176, %c0_177, %c64] : memref<2x8x256xf32, #tpu.memory_space<vmem>>, vector<2x8x82xf32>
    %c10 = arith.constant 10 : index
    %c0_178 = arith.constant 0 : index
    %c0_179 = arith.constant 0 : index
    %299 = vector.load %arg1[%c10, %c0_178, %c0_179] : memref<14x8x8xf32, #tpu.memory_space<vmem>>, vector<1x8x8xf32>
    %300 = vector.shape_cast %299 : vector<1x8x8xf32> to vector<8x8xf32>
    %301 = vector.shape_cast %300 : vector<8x8xf32> to vector<1x8x8xf32>
    %302 = vector.shape_cast %301 : vector<1x8x8xf32> to vector<1x8x8xf32>
    %303 = vector.broadcast %302 : vector<1x8x8xf32> to vector<2x8x8xf32>
    %cst_180 = arith.constant dense<0.000000e+00> : vector<2x8x82xf32>
    %304 = tpu.matmul %303, %298, %cst_180 {dimension_numbers = #tpu.dot_dimension_numbers<[2], [1], [1], [2], [0, 0, 0, 1, 1, 2], [0], [0]>} : vector<2x8x8xf32>, vector<2x8x82xf32>, vector<2x8x82xf32> -> vector<2x8x82xf32>
    %c0_181 = arith.constant 0 : index
    %c0_182 = arith.constant 0 : index
    %c96_183 = arith.constant 96 : index
    %305 = vector.load %arg7[%c0_181, %c0_182, %c96_183] : memref<2x8x256xf32, #tpu.memory_space<vmem>>, vector<2x8x82xf32>
    %c11 = arith.constant 11 : index
    %c0_184 = arith.constant 0 : index
    %c0_185 = arith.constant 0 : index
    %306 = vector.load %arg1[%c11, %c0_184, %c0_185] : memref<14x8x8xf32, #tpu.memory_space<vmem>>, vector<1x8x8xf32>
    %307 = vector.shape_cast %306 : vector<1x8x8xf32> to vector<8x8xf32>
    %308 = vector.shape_cast %307 : vector<8x8xf32> to vector<1x8x8xf32>
    %309 = vector.shape_cast %308 : vector<1x8x8xf32> to vector<1x8x8xf32>
    %310 = vector.broadcast %309 : vector<1x8x8xf32> to vector<2x8x8xf32>
    %cst_186 = arith.constant dense<0.000000e+00> : vector<2x8x82xf32>
    %311 = tpu.matmul %310, %305, %cst_186 {dimension_numbers = #tpu.dot_dimension_numbers<[2], [1], [1], [2], [0, 0, 0, 1, 1, 2], [0], [0]>} : vector<2x8x8xf32>, vector<2x8x82xf32>, vector<2x8x82xf32> -> vector<2x8x82xf32>
    %312 = arith.addf %304, %311 : vector<2x8x82xf32>
    %cst_187 = arith.constant dense<0.000000e+00> : vector<2x8xf32>
    %313 = vector.multi_reduction <add>, %312, %cst_187 [2] : vector<2x8x82xf32> to vector<2x8xf32>
    %314 = vector.shape_cast %313 : vector<2x8xf32> to vector<2x8x1xf32>
    %cst_188 = arith.constant dense<0.000000e+00> : vector<8x1xf32>
    %315 = vector.multi_reduction <add>, %314, %cst_188 [0] : vector<2x8x1xf32> to vector<8x1xf32>
    %316 = vector.shape_cast %315 : vector<8x1xf32> to vector<1x8x1xf32>
    %cst_189 = arith.constant 1.640000e+02 : f32
    %317 = vector.broadcast %cst_189 : f32 to vector<1x8x1xf32>
    %318 = arith.divf %316, %317 : vector<1x8x1xf32>
    %319 = vector.broadcast %318 : vector<1x8x1xf32> to vector<2x8x82xf32>
    %320 = arith.subf %312, %319 : vector<2x8x82xf32>
    %321 = arith.mulf %320, %320 : vector<2x8x82xf32>
    %cst_190 = arith.constant dense<0.000000e+00> : vector<2x8xf32>
    %322 = vector.multi_reduction <add>, %321, %cst_190 [2] : vector<2x8x82xf32> to vector<2x8xf32>
    %323 = vector.shape_cast %322 : vector<2x8xf32> to vector<2x8x1xf32>
    %cst_191 = arith.constant dense<0.000000e+00> : vector<8x1xf32>
    %324 = vector.multi_reduction <add>, %323, %cst_191 [0] : vector<2x8x1xf32> to vector<8x1xf32>
    %325 = vector.shape_cast %324 : vector<8x1xf32> to vector<1x8x1xf32>
    %cst_192 = arith.constant 1.640000e+02 : f32
    %326 = vector.broadcast %cst_192 : f32 to vector<1x8x1xf32>
    %327 = arith.divf %325, %326 : vector<1x8x1xf32>
    %cst_193 = arith.constant 9.99999974E-6 : f32
    %328 = vector.broadcast %cst_193 : f32 to vector<1x8x1xf32>
    %329 = arith.addf %327, %328 : vector<1x8x1xf32>
    %330 = math.rsqrt %329 : vector<1x8x1xf32>
    %331 = vector.broadcast %330 : vector<1x8x1xf32> to vector<2x8x82xf32>
    %332 = arith.mulf %320, %331 : vector<2x8x82xf32>
    %333 = vector.extract_strided_slice %8 {offsets = [10, 0, 0], sizes = [1, 8, 1], strides = [1, 1, 1]} : vector<14x8x1xf32> to vector<1x8x1xf32>
    %334 = vector.broadcast %333 : vector<1x8x1xf32> to vector<2x8x82xf32>
    %335 = arith.mulf %332, %334 : vector<2x8x82xf32>
    %336 = vector.extract_strided_slice %8 {offsets = [11, 0, 0], sizes = [1, 8, 1], strides = [1, 1, 1]} : vector<14x8x1xf32> to vector<1x8x1xf32>
    %337 = vector.broadcast %336 : vector<1x8x1xf32> to vector<2x8x82xf32>
    %338 = arith.addf %335, %337 : vector<2x8x82xf32>
    %cst_194 = arith.constant 5.000000e-01 : f32
    %339 = vector.broadcast %cst_194 : f32 to vector<2x8x82xf32>
    %340 = arith.mulf %339, %338 : vector<2x8x82xf32>
    %341 = math.tanh %340 : vector<2x8x82xf32>
    %cst_195 = arith.constant 1.000000e+00 : f32
    %342 = vector.broadcast %cst_195 : f32 to vector<2x8x82xf32>
    %343 = arith.addf %342, %341 : vector<2x8x82xf32>
    %344 = arith.mulf %341, %343 : vector<2x8x82xf32>
    %345 = arith.mulf %341, %341 : vector<2x8x82xf32>
    %cst_196 = arith.constant 1.000000e+00 : f32
    %346 = vector.broadcast %cst_196 : f32 to vector<2x8x82xf32>
    %347 = arith.addf %346, %345 : vector<2x8x82xf32>
    %348 = arith.divf %344, %347 : vector<2x8x82xf32>
    %c0_197 = arith.constant 0 : index
    %c0_198 = arith.constant 0 : index
    %c0_199 = arith.constant 0 : index
    %349 = vector.load %arg8[%c0_197, %c0_198, %c0_199] : memref<2x8x18xf32, #tpu.memory_space<vmem>>, vector<2x8x18xf32>
    %350 = vector.extract_strided_slice %348 {offsets = [0, 0, 64], sizes = [2, 8, 18], strides = [1, 1, 1]} : vector<2x8x82xf32> to vector<2x8x18xf32>
    %351 = arith.addf %349, %350 : vector<2x8x18xf32>
    %c0_200 = arith.constant 0 : index
    %c0_201 = arith.constant 0 : index
    %c0_202 = arith.constant 0 : index
    %352 = vector.load %arg8[%c0_200, %c0_201, %c0_202] : memref<2x8x18xf32, #tpu.memory_space<vmem>>, vector<2x8x18xf32>
    tpu.vector_store %arg8[%c0_200, %c0_201, %c0_202], %351 {strides = array<i32>} : memref<2x8x18xf32, #tpu.memory_space<vmem>>, vector<2x8x18xf32>,
    %c0_203 = arith.constant 0 : index
    %c0_204 = arith.constant 0 : index
    %c128_205 = arith.constant 128 : index
    %353 = vector.load %arg7[%c0_203, %c0_204, %c128_205] : memref<2x8x256xf32, #tpu.memory_space<vmem>>, vector<2x8x18xf32>
    %354 = vector.extract_strided_slice %348 {offsets = [0, 0, 0], sizes = [2, 8, 18], strides = [1, 1, 1]} : vector<2x8x82xf32> to vector<2x8x18xf32>
    %355 = arith.addf %353, %354 : vector<2x8x18xf32>
    %c0_206 = arith.constant 0 : index
    %c0_207 = arith.constant 0 : index
    %c128_208 = arith.constant 128 : index
    %356 = vector.load %arg7[%c0_206, %c0_207, %c128_208] : memref<2x8x256xf32, #tpu.memory_space<vmem>>, vector<2x8x18xf32>
    tpu.vector_store %arg7[%c0_206, %c0_207, %c128_208], %355 {strides = array<i32>} : memref<2x8x256xf32, #tpu.memory_space<vmem>>, vector<2x8x18xf32>,
    %c0_209 = arith.constant 0 : index
    %c0_210 = arith.constant 0 : index
    %c0_211 = arith.constant 0 : index
    %357 = vector.load %arg7[%c0_209, %c0_210, %c0_211] : memref<2x8x256xf32, #tpu.memory_space<vmem>>, vector<2x8x146xf32>
    %c12 = arith.constant 12 : index
    %c0_212 = arith.constant 0 : index
    %c0_213 = arith.constant 0 : index
    %358 = vector.load %arg1[%c12, %c0_212, %c0_213] : memref<14x8x8xf32, #tpu.memory_space<vmem>>, vector<1x8x8xf32>
    %359 = vector.shape_cast %358 : vector<1x8x8xf32> to vector<8x8xf32>
    %360 = vector.shape_cast %359 : vector<8x8xf32> to vector<1x8x8xf32>
    %361 = vector.shape_cast %360 : vector<1x8x8xf32> to vector<1x8x8xf32>
    %362 = vector.broadcast %361 : vector<1x8x8xf32> to vector<2x8x8xf32>
    %cst_214 = arith.constant dense<0.000000e+00> : vector<2x8x146xf32>
    %363 = tpu.matmul %362, %357, %cst_214 {dimension_numbers = #tpu.dot_dimension_numbers<[2], [1], [1], [2], [0, 0, 0, 1, 1, 2], [0], [0]>} : vector<2x8x8xf32>, vector<2x8x146xf32>, vector<2x8x146xf32> -> vector<2x8x146xf32>
    %c0_215 = arith.constant 0 : index
    %c0_216 = arith.constant 0 : index
    %c64_217 = arith.constant 64 : index
    %364 = vector.load %arg7[%c0_215, %c0_216, %c64_217] : memref<2x8x256xf32, #tpu.memory_space<vmem>>, vector<2x8x146xf32>
    %c13 = arith.constant 13 : index
    %c0_218 = arith.constant 0 : index
    %c0_219 = arith.constant 0 : index
    %365 = vector.load %arg1[%c13, %c0_218, %c0_219] : memref<14x8x8xf32, #tpu.memory_space<vmem>>, vector<1x8x8xf32>
    %366 = vector.shape_cast %365 : vector<1x8x8xf32> to vector<8x8xf32>
    %367 = vector.shape_cast %366 : vector<8x8xf32> to vector<1x8x8xf32>
    %368 = vector.shape_cast %367 : vector<1x8x8xf32> to vector<1x8x8xf32>
    %369 = vector.broadcast %368 : vector<1x8x8xf32> to vector<2x8x8xf32>
    %cst_220 = arith.constant dense<0.000000e+00> : vector<2x8x146xf32>
    %370 = tpu.matmul %369, %364, %cst_220 {dimension_numbers = #tpu.dot_dimension_numbers<[2], [1], [1], [2], [0, 0, 0, 1, 1, 2], [0], [0]>} : vector<2x8x8xf32>, vector<2x8x146xf32>, vector<2x8x146xf32> -> vector<2x8x146xf32>
    %371 = arith.addf %363, %370 : vector<2x8x146xf32>
    %cst_221 = arith.constant dense<0.000000e+00> : vector<2x8xf32>
    %372 = vector.multi_reduction <add>, %371, %cst_221 [2] : vector<2x8x146xf32> to vector<2x8xf32>
    %373 = vector.shape_cast %372 : vector<2x8xf32> to vector<2x8x1xf32>
    %cst_222 = arith.constant dense<0.000000e+00> : vector<8x1xf32>
    %374 = vector.multi_reduction <add>, %373, %cst_222 [0] : vector<2x8x1xf32> to vector<8x1xf32>
    %375 = vector.shape_cast %374 : vector<8x1xf32> to vector<1x8x1xf32>
    %cst_223 = arith.constant 2.920000e+02 : f32
    %376 = vector.broadcast %cst_223 : f32 to vector<1x8x1xf32>
    %377 = arith.divf %375, %376 : vector<1x8x1xf32>
    %378 = vector.broadcast %377 : vector<1x8x1xf32> to vector<2x8x146xf32>
    %379 = arith.subf %371, %378 : vector<2x8x146xf32>
    %380 = arith.mulf %379, %379 : vector<2x8x146xf32>
    %cst_224 = arith.constant dense<0.000000e+00> : vector<2x8xf32>
    %381 = vector.multi_reduction <add>, %380, %cst_224 [2] : vector<2x8x146xf32> to vector<2x8xf32>
    %382 = vector.shape_cast %381 : vector<2x8xf32> to vector<2x8x1xf32>
    %cst_225 = arith.constant dense<0.000000e+00> : vector<8x1xf32>
    %383 = vector.multi_reduction <add>, %382, %cst_225 [0] : vector<2x8x1xf32> to vector<8x1xf32>
    %384 = vector.shape_cast %383 : vector<8x1xf32> to vector<1x8x1xf32>
    %cst_226 = arith.constant 2.920000e+02 : f32
    %385 = vector.broadcast %cst_226 : f32 to vector<1x8x1xf32>
    %386 = arith.divf %384, %385 : vector<1x8x1xf32>
    %cst_227 = arith.constant 9.99999974E-6 : f32
    %387 = vector.broadcast %cst_227 : f32 to vector<1x8x1xf32>
    %388 = arith.addf %386, %387 : vector<1x8x1xf32>
    %389 = math.rsqrt %388 : vector<1x8x1xf32>
    %390 = vector.broadcast %389 : vector<1x8x1xf32> to vector<2x8x146xf32>
    %391 = arith.mulf %379, %390 : vector<2x8x146xf32>
    %392 = vector.extract_strided_slice %8 {offsets = [12, 0, 0], sizes = [1, 8, 1], strides = [1, 1, 1]} : vector<14x8x1xf32> to vector<1x8x1xf32>
    %393 = vector.broadcast %392 : vector<1x8x1xf32> to vector<2x8x146xf32>
    %394 = arith.mulf %391, %393 : vector<2x8x146xf32>
    %395 = vector.extract_strided_slice %8 {offsets = [13, 0, 0], sizes = [1, 8, 1], strides = [1, 1, 1]} : vector<14x8x1xf32> to vector<1x8x1xf32>
    %396 = vector.broadcast %395 : vector<1x8x1xf32> to vector<2x8x146xf32>
    %397 = arith.addf %394, %396 : vector<2x8x146xf32>
    %cst_228 = arith.constant 5.000000e-01 : f32
    %398 = vector.broadcast %cst_228 : f32 to vector<2x8x146xf32>
    %399 = arith.mulf %398, %397 : vector<2x8x146xf32>
    %400 = math.tanh %399 : vector<2x8x146xf32>
    %cst_229 = arith.constant 1.000000e+00 : f32
    %401 = vector.broadcast %cst_229 : f32 to vector<2x8x146xf32>
    %402 = arith.addf %401, %400 : vector<2x8x146xf32>
    %403 = arith.mulf %400, %402 : vector<2x8x146xf32>
    %404 = arith.mulf %400, %400 : vector<2x8x146xf32>
    %cst_230 = arith.constant 1.000000e+00 : f32
    %405 = vector.broadcast %cst_230 : f32 to vector<2x8x146xf32>
    %406 = arith.addf %405, %404 : vector<2x8x146xf32>
    %407 = arith.divf %403, %406 : vector<2x8x146xf32>
    %c0_231 = arith.constant 0 : index
    %c0_232 = arith.constant 0 : index
    %c0_233 = arith.constant 0 : index
    %408 = vector.load %arg8[%c0_231, %c0_232, %c0_233] : memref<2x8x18xf32, #tpu.memory_space<vmem>>, vector<2x8x18xf32>
    %409 = vector.extract_strided_slice %407 {offsets = [0, 0, 128], sizes = [2, 8, 18], strides = [1, 1, 1]} : vector<2x8x146xf32> to vector<2x8x18xf32>
    %410 = arith.addf %408, %409 : vector<2x8x18xf32>
    %c0_234 = arith.constant 0 : index
    %c0_235 = arith.constant 0 : index
    %c0_236 = arith.constant 0 : index
    %411 = vector.load %arg8[%c0_234, %c0_235, %c0_236] : memref<2x8x18xf32, #tpu.memory_space<vmem>>, vector<2x8x18xf32>
    tpu.vector_store %arg8[%c0_234, %c0_235, %c0_236], %410 {strides = array<i32>} : memref<2x8x18xf32, #tpu.memory_space<vmem>>, vector<2x8x18xf32>,
    %c0_237 = arith.constant 0 : index
    %c0_238 = arith.constant 0 : index
    %412 = vector.load %arg4[%c0_237, %c0_238] : memref<3x128xf32, #tpu.memory_space<vmem>>, vector<3x128xf32>
    %c0_239 = arith.constant 0 : index
    %c0_240 = arith.constant 0 : index
    %c0_241 = arith.constant 0 : index
    %413 = vector.load %arg8[%c0_239, %c0_240, %c0_241] : memref<2x8x18xf32, #tpu.memory_space<vmem>>, vector<2x8x18xf32>
    %c0_242 = arith.constant 0 : index
    %c0_243 = arith.constant 0 : index
    %414 = vector.load %arg5[%c0_242, %c0_243] : memref<8x1xf32, #tpu.memory_space<vmem>>, vector<8x1xf32>
    %415 = vector.shape_cast %414 : vector<8x1xf32> to vector<1x8x1xf32>
    %416 = vector.broadcast %415 : vector<1x8x1xf32> to vector<2x8x18xf32>
    %417 = arith.mulf %413, %416 : vector<2x8x18xf32>
    %cst_244 = arith.constant dense<0.000000e+00> : vector<2x18xf32>
    %418 = vector.multi_reduction <add>, %417, %cst_244 [1] : vector<2x8x18xf32> to vector<2x18xf32>
    %419 = vector.extract_strided_slice %412 {offsets = [2, 0], sizes = [1, 1], strides = [1, 1]} : vector<3x128xf32> to vector<1x1xf32>
    %420 = vector.broadcast %419 : vector<1x1xf32> to vector<2x18xf32>
    %421 = arith.addf %418, %420 : vector<2x18xf32>
    %cst_245 = arith.constant 0.000000e+00 : f32
    %422 = vector.broadcast %cst_245 : f32 to vector<2x18xf32>
    %423 = arith.maximumf %421, %422 : vector<2x18xf32>
    %c0_246 = arith.constant 0 : index
    %c0_247 = arith.constant 0 : index
    %424 = vector.load %arg3[%c0_246, %c0_247] : memref<18x128xf32, #tpu.memory_space<vmem>>, vector<18x128xf32>
    %cst_248 = arith.constant dense<0.000000e+00> : vector<2x128xf32>
    %425 = tpu.matmul %423, %424, %cst_248 {dimension_numbers = #tpu.dot_dimension_numbers<[1], [0], [0], [1], [0, 0, 1, 1], [], []>} : vector<2x18xf32>, vector<18x128xf32>, vector<2x128xf32> -> vector<2x128xf32>
    %426 = vector.extract_strided_slice %412 {offsets = [0, 0], sizes = [1, 128], strides = [1, 1]} : vector<3x128xf32> to vector<1x128xf32>
    %427 = vector.broadcast %426 : vector<1x128xf32> to vector<2x128xf32>
    %428 = arith.addf %425, %427 : vector<2x128xf32>
    %cst_249 = arith.constant 0.000000e+00 : f32
    %429 = vector.broadcast %cst_249 : f32 to vector<2x128xf32>
    %430 = arith.maximumf %428, %429 : vector<2x128xf32>
    %431 = vector.extract_strided_slice %412 {offsets = [1, 0], sizes = [1, 128], strides = [1, 1]} : vector<3x128xf32> to vector<1x128xf32>
    %432 = vector.broadcast %431 : vector<1x128xf32> to vector<2x128xf32>
    %433 = arith.mulf %430, %432 : vector<2x128xf32>
    %cst_250 = arith.constant dense<0.000000e+00> : vector<2xf32>
    %434 = vector.multi_reduction <add>, %433, %cst_250 [1] : vector<2x128xf32> to vector<2xf32>
    %435 = vector.shape_cast %434 : vector<2xf32> to vector<2x1xf32>
    %436 = vector.extract_strided_slice %412 {offsets = [2, 1], sizes = [1, 1], strides = [1, 1]} : vector<3x128xf32> to vector<1x1xf32>
    %437 = vector.broadcast %436 : vector<1x1xf32> to vector<2x1xf32>
    %438 = arith.addf %435, %437 : vector<2x1xf32>
    %c0_251 = arith.constant 0 : index
    %c0_252 = arith.constant 0 : index
    %439 = vector.load %arg6[%c0_251, %c0_252] : memref<2x1xf32, #tpu.memory_space<vmem>>, vector<2x1xf32>
    tpu.vector_store %arg6[%c0_251, %c0_252], %438 {strides = array<i32>} : memref<2x1xf32, #tpu.memory_space<vmem>>, vector<2x1xf32>,
    return
  }
}

</mosaic_0001>

<bundles_post_ra>
// kernel: gwavenet2d_forward.1
= control target key start
LH: loop header
LB: loop body
LE: loop exit
PB: predicated region body
PF: predicated region fallthrough
CT: control target
= control target key end

     0   :  { %vm25_vm0 = vcmask 1047680   ;;  %vm28_vm1 = vcmask 130052   ;;  %vm33_vm2 = vcmask 125952   ;;  %v3337_v0 = vmov 0.0   ;;  %s3339_s25 = smov 2   ;;  %s3342_s10 = smov 4   ;;  %s3857_s0 = inlined_call_operand.vmem [shape: f32[2,4,16], index: 0, kind: input, shape index: {}]   ;;  %s3858_s1 = inlined_call_operand.vmem [shape: f32[14,8,8], index: 1, kind: input, shape index: {}]   ;;  %s3859_s2 = inlined_call_operand.vmem [shape: f32[14,8,1], index: 2, kind: input, shape index: {}]   ;;  %s3860_s5 = inlined_call_operand.vmem [shape: f32[8,1], index: 5, kind: input, shape index: {}]   ;;  %s3861_s4 = inlined_call_operand.vmem [shape: f32[3,128], index: 4, kind: input, shape index: {}]   ;;  %s3862_s3 = inlined_call_operand.vmem [shape: f32[18,128], index: 3, kind: input, shape index: {}]   ;;  %s3863_s6 = inlined_call_operand.vmem [shape: f32[2,1], index: 6, kind: output, shape index: {}]  }
   0x1   :  { %23 = vst [vmem:[#allocation2] sm:$0xff] %v3337_v0  ;;  %27 = vst.msk [vmem:[#allocation2 + $0x18] sm:$0xff] %vm25_vm0, %v3337_v0  ;;  %v32_v1 = vld [vmem:[%s3857_s0 + $0x4] sm:$0xf]  ;;  %v31_v2 = vld [vmem:[%s3857_s0] sm:$0xf]  ;;  %3053 = vmatprep.subr.mxu1 %v3337_v0  ;;  %3063 = vmatprep.subr.mxu0 %v3337_v0 }
   0x2   :  { %26 = vst.msk [vmem:[#allocation2 + $0x8] sm:$0xff] %vm25_vm0, %v3337_v0  ;;  %vm3338_vm3 = vmmov 0   ;;  %3205 = vrot.lane.b32.xlu1 %v3337_v0, %s3339_s25  ;;  %s3340_s0 = smov 1   ;;  %vm63_vm4 = vcmask 7168   ;;  %v2958_v10 = vld [vmem:[%s3858_s1 + $0x8] sm:$0xff]  ;;  %vm66_vm5 = vcmask 64512  }
   0x3   :  { %30 = vst.msk [vmem:[#allocation2 + $0x18] sm:$0xf0] %vm28_vm1, %v3337_v0  ;;  %29 = vst.msk [vmem:[#allocation2 + $0x8] sm:$0xf0] %vm28_vm1, %v3337_v0  ;;  %3055 = vmatprep.mubr.msk.f32.mxu1 %vm3338_vm3, %v3337_v0  ;;  %3065 = vmatprep.mubr.msk.f32.mxu0 %vm3338_vm3, %v3337_v0  ;;  %vm222_vm6 = vcmask 15360   ;;  %v54_v18 = vld [vmem:[%s3858_s1] sm:$0xff] }
   0x4   :  { %35 = vst.msk [vmem:[#allocation2 + $0x18] sm:$0xf] %vm33_vm2, %v32_v1  ;;  %34 = vst.msk [vmem:[#allocation2 + $0x8] sm:$0xf] %vm33_vm2, %v31_v2  ;;  %3200 = vrot.lane.b32.xlu0 %v3337_v0, %s3340_s0  ;;  %vm374_vm7 = vcmask 146432   ;;  %v3341_v33 = vmov 0  }
   0x5   :  { %3209 = vset.pattern.permute.xlu1 %v3341_v33  ;;  %v36_v34 = vld [vmem:[%s3859_s2] sm:$0xff]  ;;  %3210 = vset.pattern.permute.xlu0 %v3341_v33  ;;  %v37_v45 = vld [vmem:[%s3859_s2 + $0x8] sm:$0xff]  ;;  %vm605_vm8 = vcmask 31744   ;;  %vm757_vm9 = vcmask 179200   ;;  %s3343_s19 = smov 8   ;;  %vm1155_vm10 = vcmask 211968  }
   0x6   :  { %s3344_s27 = smov 16   ;;  %vm1402_vm11 = vcmask 130048   ;;  %vm1554_vm12 = vcmask 277504   ;;  %s3345_s12 = smov 32   ;;  %vm1801_vm13 = vcmask 261120   ;;  %vm1953_vm14 = vcmask 408576  }
   0x7   :  { %s3346_s21 = smov 64   ;;  %vm2200_vm15 = vcmask 523264   ;;  %vm2352_vm0 = vcmask 670720   ;;  %s3348_s11 = smov 120   ;;  %vm2860_vm1 = vcmask 1041408   ;;  %vm2856_vm2 = vcmask 1041409  }
   0x8   :  { %s3349_s14 = smov 112   ;;  %s3350_s15 = smov 96  }
   0x9   :  { %s3351_s23 = smov 127  }
   0xb   :  { %v53_v3 = vld [vmem:[#allocation2 + $0x18] sm:$0xff]  ;;  %v51_v4 = vld [vmem:[#allocation2 + $0x8] sm:$0xff] }
   0xc   :  { %144 = vrot.lane.b32.xlu1 %v53_v3, %s3340_s0  ;;  %61 = vrot.lane.b32.xlu0 %v51_v4, %s3340_s0 }
  0x10   :  { %300 = vrot.lane.b32.xlu1 %v53_v3, %s3339_s25  ;;  %220 = vrot.lane.b32.xlu0 %v51_v4, %s3339_s25 }
  0x74   :  { %v3206_v5 = vpop.permute.xlu1 %3205 }
  0x75   :  { %v3208_v13 = vunpack.i.h.bf16 %v3206_v5  ;;  %v3207_v14 = vunpack.i.l.bf16 %v3206_v5 }
  0x76   :  { %v3201_v6 = vpop.permute.xlu0 %3200 }
  0x77   :  { %v3202_v7 = vunpack.i.l.bf16 %v3201_v6  ;;  %v3203_v11 = vunpack.i.h.bf16 %v3201_v6 }
  0x7e   :  { %v145_v8 = vpop.permute.xlu1 %144  ;;  %v62_v9 = vpop.permute.xlu0 %61 }
  0x7f   :  { %v64_v12 = vsel %vm63_vm4, %v3202_v7, %v62_v9  ;;  %v146_v15 = vsel %vm63_vm4, %v3203_v11, %v145_v8 }
  0x80   :  { %3054 = vmatpush3.msra.mxu1 %v64_v12 }
  0x81   :  { %3056 = vmatmul.mubr.msk.f32.vlgmr.msra.gmra.mxu1 %vm66_vm5, %v2958_v10  ;;  %3058 = vmatprep.subr.mxu1 %v3337_v0 }
  0x82   :  { %v301_v16 = vpop.permute.xlu1 %300  ;;  %3059 = vmatpush3.msra.mxu1 %v146_v15  ;;  %v221_v17 = vpop.permute.xlu0 %220  ;;  %3060 = vmatprep.mubr.msk.f32.mxu1 %vm3338_vm3, %v3337_v0 }
  0x83   :  { %v302_v19 = vsel %vm222_vm6, %v3208_v13, %v301_v16  ;;  %v223_v20 = vsel %vm222_vm6, %v3207_v14, %v221_v17  ;;  %3068 = vmatprep.subr.mxu1 %v3337_v0 }
  0x84   :  { %3064 = vmatpush3.msra.mxu0 %v223_v20 }
  0x85   :  { %3061 = vmatmul.mubr.msk.f32.vlgmr.msra.gmra.mxu1 %vm66_vm5, %v2958_v10  ;;  %3066 = vmatmul.mubr.msk.f32.vlgmr.msra.gmra.mxu0 %vm66_vm5, %v54_v18 }
  0x86   :  { %3069 = vmatpush3.msra.mxu1 %v302_v19  ;;  %3070 = vmatprep.mubr.msk.f32.mxu1 %vm3338_vm3, %v3337_v0  ;;  %v2964_v19 = vld [vmem:[%s3858_s1 + $0x18] sm:$0xff] }
  0x87   :  { %3073 = vmatprep.subr.mxu0 %v3337_v0  ;;  %3078 = vmatprep.subr.mxu1 %v3337_v0 }
  0x88   :  { %3075 = vmatprep.mubr.msk.f32.mxu0 %vm3338_vm3, %v3337_v0 }
  0x89   :  { %3071 = vmatmul.mubr.msk.f32.vlgmr.msra.gmra.mxu1 %vm66_vm5, %v54_v18 }
  0x8a   :  { %3080 = vmatprep.mubr.msk.f32.mxu1 %vm3338_vm3, %v3337_v0 }
 0x141   :  { %v136_v21 = vpop.f32.mrf.mxu1 }
 0x143   :  { %v3057_v22 = vpop.f32.mrf.mxu1 }
 0x145   :  { %v214_v23 = vpop.f32.mrf.mxu1  ;;  %v294_v24 = vpop.f32.mrf.mxu0 }
 0x146   :  { %v295_v25 = vadd.f32 %v294_v24, %v136_v21 }
 0x147   :  { %v3062_v26 = vpop.f32.mrf.mxu1  ;;  %v3067_v27 = vpop.f32.mrf.mxu0 }
 0x148   :  { %v375_v28 = vsel %vm374_vm7, %v295_v25, 0.0  ;;  %v2963_v26 = vld [vmem:[%s3858_s1 + $0x10] sm:$0xff] }
 0x149   :  { %v370_v29 = vpop.f32.mrf.mxu1  ;;  %376 = vadd.xlane.f32.xlu0 %v375_v28 }
 0x14a   :  { %v371_v30 = vadd.f32 %v370_v29, %v214_v23 }
 0x14b   :  { %v3072_v31 = vpop.f32.mrf.mxu1 }
 0x14c   :  { %v378_v32 = vsel %vm374_vm7, %v371_v30, 0.0 }
 0x14d   :  { %379 = vadd.xlane.f32.xlu1 %v378_v32 }
 0x15e   :  { %402 = vperm.xlu1 %3209, %v36_v34  }
 0x162   :  { %3212 = vrot.lane.b32.xlu1 %v3337_v0, %s3339_s25 }
 0x166   :  { %3217 = vrot.lane.b32.xlu1 %v3337_v0, %s3342_s10 }
 0x1d2   :  { %v377_v35 = vpop.xlane.xlu0 %376 }
 0x1d6   :  { %v380_v36 = vpop.xlane.xlu1 %379 }
 0x1d7   :  { %v381_v37 = vadd.f32 %v380_v36, %v377_v35 }
 0x1d9   :  { %v383_v38 = vmul.f32 0.027777778, %v381_v37 }
 0x1da   :  { %v403_v52 = vpop.permute.xlu1 %402 }
 0x1db   :  { %v384_v39 = vsub.f32 %v295_v25, %v383_v38  ;;  %v385_v40 = vsub.f32 %v371_v30, %v383_v38 }
 0x1dd   :  { %v386_v41 = vmul.f32 %v384_v39, %v384_v39  ;;  %v387_v43 = vmul.f32 %v385_v40, %v385_v40 }
 0x1de   :  { %v3213_v15 = vpop.permute.xlu1 %3212 }
 0x1df   :  { %v388_v42 = vsel %vm374_vm7, %v386_v41, 0.0  ;;  %v391_v44 = vsel %vm374_vm7, %v387_v43, 0.0  ;;  %v3214_v17 = vunpack.i.l.bf16 %v3213_v15  ;;  %v3215_v21 = vunpack.i.h.bf16 %v3213_v15 }
 0x1e0   :  { %389 = vadd.xlane.f32.xlu0 %v388_v42 }
 0x1e2   :  { %v3218_v16 = vpop.permute.xlu1 %3217 }
 0x1e3   :  { %v3219_v24 = vunpack.i.l.bf16 %v3218_v16  ;;  %v3220_v28 = vunpack.i.h.bf16 %v3218_v16 }
 0x1e4   :  { %392 = vadd.xlane.f32.xlu0 %v391_v44 }
 0x1fa   :  { %409 = vperm.xlu0 %3210, %v37_v45  }
 0x269   :  { %v390_v46 = vpop.xlane.xlu0 %389 }
 0x26d   :  { %v393_v47 = vpop.xlane.xlu0 %392 }
 0x26e   :  { %v394_v48 = vadd.f32 %v393_v47, %v390_v46 }
 0x270   :  { %v395_v49 = vmul.f32 0.027777778, %v394_v48 }
 0x272   :  { %v396_v50 = vadd.f32 1e-05, %v395_v49 }
 0x274   :  { %3266 = vrsqrt.f32 %v396_v50 }
 0x275   :  { %v410_v55 = vpop.permute.xlu0 %409 }
 0x281   :  { %v3267_v51 = vpop.eup %3266 }
 0x282   :  { %v398_v53 = vmul.f32 %v3267_v51, %v384_v39  ;;  %v399_v54 = vmul.f32 %v3267_v51, %v385_v40 }
 0x284   :  { %v405_v56 = vmul.f32 %v403_v52, %v398_v53  ;;  %v406_v57 = vmul.f32 %v403_v52, %v399_v54  ;;  %v38_v53 = vld [vmem:[%s3859_s2 + $0x10] sm:$0xff]  ;;  %v39_v54 = vld [vmem:[%s3859_s2 + $0x18] sm:$0xff] }
 0x286   :  { %v412_v58 = vadd.f32 %v410_v55, %v405_v56  ;;  %v413_v59 = vadd.f32 %v410_v55, %v406_v57 }
 0x288   :  { %v414_v60 = vmul.f32 0.5, %v412_v58  ;;  %v415_v61 = vmul.f32 0.5, %v413_v59 }
 0x28a   :  { %3268 = vtanh.f32 %v414_v60 }
 0x28b   :  { %3270 = vtanh.f32 %v415_v61 }
 0x297   :  { %v3269_v62 = vpop.eup %3268 }
 0x298   :  { %v3271_v63 = vpop.eup %3270  ;;  %v422_v1 = vmul.f32 %v3269_v62, %v3269_v62  ;;  %v418_v5 = vadd.f32 1.0, %v3269_v62 }
 0x299   :  { %v423_v2 = vmul.f32 %v3271_v63, %v3271_v63  ;;  %v419_v6 = vadd.f32 1.0, %v3271_v63 }
 0x29a   :  { %v424_v3 = vadd.f32 1.0, %v422_v1  ;;  %v420_v7 = vmul.f32 %v3269_v62, %v418_v5 }
 0x29b   :  { %v425_v4 = vadd.f32 1.0, %v423_v2  ;;  %v421_v9 = vmul.f32 %v3271_v63, %v419_v6 }
 0x29c   :  { %3272 = vrcp.f32 %v424_v3 }
 0x29d   :  { %3274 = vrcp.f32 %v425_v4 }
 0x2a9   :  { %v3273_v8 = vpop.eup %3272 }
 0x2aa   :  { %v3275_v10 = vpop.eup %3274  ;;  %v427_v11 = vmul.f32 %v3273_v8, %v420_v7 }
 0x2ab   :  { %v429_v12 = vmul.f32 %v3275_v10, %v421_v9 }
 0x2ac   :  { %430 = vst.msk [vmem:[#allocation3] sm:$0xff] %vm374_vm7, %v427_v11  ;;  %432 = vst.msk [vmem:[#allocation2 + $0x8] sm:$0xff] %vm374_vm7, %v427_v11 }
 0x2ad   :  { %431 = vst.msk [vmem:[#allocation3 + $0x8] sm:$0xff] %vm374_vm7, %v429_v12  ;;  %433 = vst.msk [vmem:[#allocation2 + $0x18] sm:$0xff] %vm374_vm7, %v429_v12 }
 0x2b3   :  { %v3451_v13 = vld [vmem:[#allocation2 + $0x8] sm:$0xff] }
 0x2b4   :  { %446 = vrot.lane.b32.xlu1 %v3451_v13, %s3339_s25  ;;  %v3455_v14 = vld [vmem:[#allocation2 + $0x18] sm:$0xff] }
 0x2b8   :  { %527 = vrot.lane.b32.xlu1 %v3455_v14, %s3339_s25 }
 0x2bc   :  { %603 = vrot.lane.b32.xlu1 %v3451_v13, %s3342_s10 }
 0x2c0   :  { %683 = vrot.lane.b32.xlu1 %v3455_v14, %s3342_s10 }
 0x326   :  { %v447_v18 = vpop.permute.xlu1 %446 }
 0x327   :  { %v448_v20 = vsel %vm222_vm6, %v3214_v17, %v447_v18 }
 0x328   :  { %3074 = vmatpush3.msra.mxu0 %v448_v20 }
 0x329   :  { %3076 = vmatmul.mubr.msk.f32.vlgmr.msra.gmra.mxu0 %vm66_vm5, %v2964_v19  ;;  %3083 = vmatprep.subr.mxu0 %v3337_v0 }
 0x32a   :  { %v528_v22 = vpop.permute.xlu1 %527  ;;  %3085 = vmatprep.mubr.msk.f32.mxu0 %vm3338_vm3, %v3337_v0 }
 0x32b   :  { %v529_v23 = vsel %vm222_vm6, %v3215_v21, %v528_v22 }
 0x32c   :  { %3079 = vmatpush3.msra.mxu1 %v529_v23 }
 0x32d   :  { %3081 = vmatmul.mubr.msk.f32.vlgmr.msra.gmra.mxu1 %vm66_vm5, %v2964_v19  ;;  %3088 = vmatprep.subr.mxu1 %v3337_v0 }
 0x32e   :  { %v604_v25 = vpop.permute.xlu1 %603  ;;  %3090 = vmatprep.mubr.msk.f32.mxu1 %vm3338_vm3, %v3337_v0 }
 0x32f   :  { %v606_v27 = vsel %vm605_vm8, %v3219_v24, %v604_v25 }
 0x330   :  { %3084 = vmatpush3.msra.mxu0 %v606_v27 }
 0x331   :  { %3086 = vmatmul.mubr.msk.f32.vlgmr.msra.gmra.mxu0 %vm66_vm5, %v2963_v26  ;;  %3093 = vmatprep.subr.mxu0 %v3337_v0 }
 0x332   :  { %v684_v29 = vpop.permute.xlu1 %683  ;;  %3095 = vmatprep.mubr.msk.f32.mxu0 %vm3338_vm3, %v3337_v0 }
 0x333   :  { %v685_v30 = vsel %vm605_vm8, %v3220_v28, %v684_v29 }
 0x334   :  { %3089 = vmatpush3.msra.mxu1 %v685_v30 }
 0x335   :  { %3091 = vmatmul.mubr.msk.f32.vlgmr.msra.gmra.mxu1 %vm66_vm5, %v2963_v26  ;;  %3098 = vmatprep.subr.mxu1 %v3337_v0 }
 0x336   :  { %3100 = vmatprep.mubr.msk.f32.mxu1 %vm3338_vm3, %v3337_v0 }
 0x3e9   :  { %v519_v31 = vpop.f32.mrf.mxu0 }
 0x3eb   :  { %v3077_v32 = vpop.f32.mrf.mxu0 }
 0x3ed   :  { %v597_v33 = vpop.f32.mrf.mxu1 }
 0x3ef   :  { %v3082_v34 = vpop.f32.mrf.mxu1 }
 0x3f1   :  { %v677_v35 = vpop.f32.mrf.mxu0 }
 0x3f2   :  { %v678_v36 = vadd.f32 %v677_v35, %v519_v31  ;;  %v2970_v31 = vld [vmem:[%s3858_s1 + $0x28] sm:$0xff] }
 0x3f3   :  { %v3087_v37 = vpop.f32.mrf.mxu0 }
 0x3f4   :  { %v758_v38 = vsel %vm757_vm9, %v678_v36, 0.0 }
 0x3f5   :  { %v753_v39 = vpop.f32.mrf.mxu1  ;;  %759 = vadd.xlane.f32.xlu1 %v758_v38 }
 0x3f6   :  { %v754_v40 = vadd.f32 %v753_v39, %v597_v33 }
 0x3f7   :  { %v3092_v41 = vpop.f32.mrf.mxu1 }
 0x3f8   :  { %v761_v42 = vsel %vm757_vm9, %v754_v40, 0.0 }
 0x3f9   :  { %762 = vadd.xlane.f32.xlu0 %v761_v42 }
 0x47e   :  { %v760_v43 = vpop.xlane.xlu1 %759 }
 0x482   :  { %v763_v44 = vpop.xlane.xlu0 %762 }
 0x483   :  { %v764_v45 = vadd.f32 %v763_v44, %v760_v43 }
 0x485   :  { %v766_v46 = vmul.f32 0.022727273, %v764_v45 }
 0x487   :  { %v767_v47 = vsub.f32 %v678_v36, %v766_v46  ;;  %v768_v48 = vsub.f32 %v754_v40, %v766_v46  ;;  %v2969_v40 = vld [vmem:[%s3858_s1 + $0x20] sm:$0xff] }
 0x489   :  { %v770_v49 = vmul.f32 %v768_v48, %v768_v48  ;;  %v769_v50 = vmul.f32 %v767_v47, %v767_v47 }
 0x48b   :  { %v774_v51 = vsel %vm757_vm9, %v770_v49, 0.0  ;;  %v771_v52 = vsel %vm757_vm9, %v769_v50, 0.0 }
 0x48c   :  { %775 = vadd.xlane.f32.xlu0 %v774_v51  ;;  %772 = vadd.xlane.f32.xlu1 %v771_v52 }
 0x49d   :  { %785 = vperm.xlu1 %3209, %v38_v53  }
 0x4a1   :  { %3222 = vrot.lane.b32.xlu1 %v3337_v0, %s3342_s10 }
 0x4a2   :  { %792 = vperm.xlu0 %3210, %v39_v54   ;;  %v40_v54 = vld [vmem:[%s3859_s2 + $0x20] sm:$0xff] }
 0x4a5   :  { %3227 = vrot.lane.b32.xlu1 %v3337_v0, %s3343_s19 }
 0x515   :  { %v776_v55 = vpop.xlane.xlu0 %775  ;;  %v773_v56 = vpop.xlane.xlu1 %772 }
 0x516   :  { %v777_v57 = vadd.f32 %v776_v55, %v773_v56 }
 0x518   :  { %v778_v58 = vmul.f32 0.022727273, %v777_v57 }
 0x519   :  { %v786_v63 = vpop.permute.xlu1 %785 }
 0x51a   :  { %v779_v59 = vadd.f32 1e-05, %v778_v58 }
 0x51c   :  { %3276 = vrsqrt.f32 %v779_v59 }
 0x51d   :  { %v793_v3 = vpop.permute.xlu0 %792 }
 0x529   :  { %v3277_v60 = vpop.eup %3276 }
 0x52a   :  { %v781_v61 = vmul.f32 %v3277_v60, %v767_v47  ;;  %v782_v62 = vmul.f32 %v3277_v60, %v768_v48 }
 0x52c   :  { %v788_v1 = vmul.f32 %v786_v63, %v781_v61  ;;  %v789_v2 = vmul.f32 %v786_v63, %v782_v62 }
 0x52e   :  { %v795_v4 = vadd.f32 %v793_v3, %v788_v1  ;;  %v796_v5 = vadd.f32 %v793_v3, %v789_v2  ;;  %v41_v2 = vld [vmem:[%s3859_s2 + $0x28] sm:$0xff] }
 0x530   :  { %v797_v6 = vmul.f32 0.5, %v795_v4  ;;  %v798_v7 = vmul.f32 0.5, %v796_v5 }
 0x532   :  { %3278 = vtanh.f32 %v797_v6 }
 0x533   :  { %3280 = vtanh.f32 %v798_v7 }
 0x53f   :  { %v3279_v8 = vpop.eup %3278 }
 0x540   :  { %v3281_v9 = vpop.eup %3280  ;;  %v805_v10 = vmul.f32 %v3279_v8, %v3279_v8  ;;  %v801_v16 = vadd.f32 1.0, %v3279_v8 }
 0x541   :  { %v806_v11 = vmul.f32 %v3281_v9, %v3281_v9  ;;  %v802_v17 = vadd.f32 1.0, %v3281_v9 }
 0x542   :  { %v807_v12 = vadd.f32 1.0, %v805_v10  ;;  %v803_v18 = vmul.f32 %v3279_v8, %v801_v16 }
 0x543   :  { %v808_v15 = vadd.f32 1.0, %v806_v11  ;;  %v804_v20 = vmul.f32 %v3281_v9, %v802_v17 }
 0x544   :  { %3282 = vrcp.f32 %v807_v12 }
 0x545   :  { %3284 = vrcp.f32 %v808_v15 }
 0x551   :  { %v3283_v19 = vpop.eup %3282 }
 0x552   :  { %v3285_v21 = vpop.eup %3284  ;;  %v3503_v22 = vmul.f32 %v3283_v19, %v803_v18 }
 0x553   :  { %v3505_v23 = vmul.f32 %v3285_v21, %v804_v20 }
 0x554   :  { %v829_v24 = vadd.f32 %v3503_v22, %v3451_v13  ;;  %v3223_v13 = vpop.permute.xlu1 %3222 }
 0x555   :  { %v830_v25 = vadd.f32 %v3505_v23, %v3455_v14  ;;  %v3224_v28 = vunpack.i.l.bf16 %v3223_v13  ;;  %v3225_v29 = vunpack.i.h.bf16 %v3223_v13 }
 0x556   :  { %831 = vst.msk [vmem:[#allocation2 + $0x8] sm:$0xff] %vm374_vm7, %v829_v24 }
 0x557   :  { %832 = vst.msk [vmem:[#allocation2 + $0x18] sm:$0xff] %vm374_vm7, %v830_v25 }
 0x558   :  { %v3228_v14 = vpop.permute.xlu1 %3227 }
 0x559   :  { %v3230_v35 = vunpack.i.h.bf16 %v3228_v14  ;;  %v3229_v36 = vunpack.i.l.bf16 %v3228_v14 }
 0x55d   :  { %v3513_v26 = vld [vmem:[#allocation2 + $0x8] sm:$0xff] }
 0x55e   :  { %v3515_v27 = vld [vmem:[#allocation2 + $0x18] sm:$0xff]  ;;  %845 = vrot.lane.b32.xlu1 %v3513_v26, %s3342_s10 }
 0x55f   :  { %926 = vrot.lane.b32.xlu0 %v3515_v27, %s3342_s10 }
 0x562   :  { %1081 = vrot.lane.b32.xlu1 %v3515_v27, %s3343_s19 }
 0x563   :  { %1002 = vrot.lane.b32.xlu0 %v3513_v26, %s3343_s19 }
 0x5d0   :  { %v846_v30 = vpop.permute.xlu1 %845 }
 0x5d1   :  { %v927_v32 = vpop.permute.xlu0 %926  ;;  %v847_v33 = vsel %vm605_vm8, %v3224_v28, %v846_v30 }
 0x5d2   :  { %v928_v34 = vsel %vm605_vm8, %v3225_v29, %v927_v32  ;;  %3094 = vmatpush3.msra.mxu0 %v847_v33 }
 0x5d3   :  { %3099 = vmatpush3.msra.mxu1 %v928_v34  ;;  %3096 = vmatmul.mubr.msk.f32.vlgmr.msra.gmra.mxu0 %vm66_vm5, %v2970_v31 }
 0x5d4   :  { %3101 = vmatmul.mubr.msk.f32.vlgmr.msra.gmra.mxu1 %vm66_vm5, %v2970_v31  ;;  %v1082_v37 = vpop.permute.xlu1 %1081  ;;  %3103 = vmatprep.subr.mxu0 %v3337_v0 }
 0x5d5   :  { %v1003_v38 = vpop.permute.xlu0 %1002  ;;  %v1083_v39 = vsel %vm66_vm5, %v3230_v35, %v1082_v37  ;;  %3108 = vmatprep.subr.mxu1 %v3337_v0  ;;  %3105 = vmatprep.mubr.msk.f32.mxu0 %vm3338_vm3, %v3337_v0 }
 0x5d6   :  { %v1004_v41 = vsel %vm66_vm5, %v3229_v36, %v1003_v38  ;;  %3109 = vmatpush3.msra.mxu1 %v1083_v39  ;;  %3110 = vmatprep.mubr.msk.f32.mxu1 %vm3338_vm3, %v3337_v0 }
 0x5d7   :  { %3104 = vmatpush3.msra.mxu0 %v1004_v41  ;;  %3118 = vmatprep.subr.mxu1 %v3337_v0 }
 0x5d8   :  { %3106 = vmatmul.mubr.msk.f32.vlgmr.msra.gmra.mxu0 %vm66_vm5, %v2969_v40  ;;  %3111 = vmatmul.mubr.msk.f32.vlgmr.msra.gmra.mxu1 %vm66_vm5, %v2969_v40 }
 0x5d9   :  { %3113 = vmatprep.subr.mxu0 %v3337_v0  ;;  %3115 = vmatprep.mubr.msk.f32.mxu0 %vm3338_vm3, %v3337_v0 }
 0x5da   :  { %3120 = vmatprep.mubr.msk.f32.mxu1 %vm3338_vm3, %v3337_v0 }
 0x693   :  { %v918_v42 = vpop.f32.mrf.mxu0 }
 0x694   :  { %v996_v43 = vpop.f32.mrf.mxu1 }
 0x695   :  { %v3097_v44 = vpop.f32.mrf.mxu0 }
 0x696   :  { %v3102_v45 = vpop.f32.mrf.mxu1  ;;  %v2976_v44 = vld [vmem:[%s3858_s1 + $0x38] sm:$0xff] }
 0x698   :  { %v1075_v46 = vpop.f32.mrf.mxu0  ;;  %v1151_v47 = vpop.f32.mrf.mxu1 }
 0x699   :  { %v1076_v48 = vadd.f32 %v1075_v46, %v918_v42  ;;  %v1152_v49 = vadd.f32 %v1151_v47, %v996_v43 }
 0x69a   :  { %v3107_v50 = vpop.f32.mrf.mxu0  ;;  %v3112_v51 = vpop.f32.mrf.mxu1 }
 0x69b   :  { %v1159_v52 = vsel %vm1155_vm10, %v1152_v49, 0.0  ;;  %v1156_v53 = vsel %vm1155_vm10, %v1076_v48, 0.0 }
 0x69c   :  { %1160 = vadd.xlane.f32.xlu1 %v1159_v52  ;;  %1157 = vadd.xlane.f32.xlu0 %v1156_v53  ;;  %v2975_v53 = vld [vmem:[%s3858_s1 + $0x30] sm:$0xff] }
 0x6ad   :  { %1183 = vperm.xlu1 %3209, %v40_v54  }
 0x6b1   :  { %3232 = vrot.lane.b32.xlu1 %v3337_v0, %s3343_s19 }
 0x6b5   :  { %3237 = vrot.lane.b32.xlu1 %v3337_v0, %s3344_s27 }
 0x725   :  { %v1161_v55 = vpop.xlane.xlu1 %1160  ;;  %v1158_v56 = vpop.xlane.xlu0 %1157 }
 0x726   :  { %v1162_v57 = vadd.f32 %v1161_v55, %v1158_v56 }
 0x728   :  { %v1164_v58 = vmul.f32 0.01923077, %v1162_v57 }
 0x729   :  { %v1184_v11 = vpop.permute.xlu1 %1183 }
 0x72a   :  { %v1165_v59 = vsub.f32 %v1076_v48, %v1164_v58  ;;  %v1166_v60 = vsub.f32 %v1152_v49, %v1164_v58 }
 0x72c   :  { %v1167_v61 = vmul.f32 %v1165_v59, %v1165_v59  ;;  %v1168_v63 = vmul.f32 %v1166_v60, %v1166_v60 }
 0x72e   :  { %v1169_v62 = vsel %vm1155_vm10, %v1167_v61, 0.0  ;;  %v1172_v1 = vsel %vm1155_vm10, %v1168_v63, 0.0 }
 0x72f   :  { %1170 = vadd.xlane.f32.xlu0 %v1169_v62 }
 0x733   :  { %1173 = vadd.xlane.f32.xlu0 %v1172_v1 }
 0x749   :  { %1190 = vperm.xlu0 %3210, %v41_v2  }
 0x7b8   :  { %v1171_v3 = vpop.xlane.xlu0 %1170 }
 0x7bc   :  { %v1174_v4 = vpop.xlane.xlu0 %1173 }
 0x7bd   :  { %v1175_v5 = vadd.f32 %v1174_v4, %v1171_v3  ;;  %v42_v4 = vld [vmem:[%s3859_s2 + $0x30] sm:$0xff] }
 0x7bf   :  { %v1176_v6 = vmul.f32 0.01923077, %v1175_v5 }
 0x7c1   :  { %v1177_v7 = vadd.f32 1e-05, %v1176_v6 }
 0x7c3   :  { %3286 = vrsqrt.f32 %v1177_v7 }
 0x7c4   :  { %v1191_v16 = vpop.permute.xlu0 %1190 }
 0x7d0   :  { %v3287_v8 = vpop.eup %3286 }
 0x7d1   :  { %v1179_v9 = vmul.f32 %v3287_v8, %v1165_v59  ;;  %v1180_v10 = vmul.f32 %v3287_v8, %v1166_v60 }
 0x7d3   :  { %v1186_v12 = vmul.f32 %v1184_v11, %v1179_v9  ;;  %v1187_v15 = vmul.f32 %v1184_v11, %v1180_v10 }
 0x7d5   :  { %v1193_v17 = vadd.f32 %v1191_v16, %v1186_v12  ;;  %v1194_v18 = vadd.f32 %v1191_v16, %v1187_v15 }
 0x7d7   :  { %v1195_v19 = vmul.f32 0.5, %v1193_v17  ;;  %v1196_v20 = vmul.f32 0.5, %v1194_v18  ;;  %v43_v17 = vld [vmem:[%s3859_s2 + $0x38] sm:$0xff] }
 0x7d9   :  { %3288 = vtanh.f32 %v1195_v19 }
 0x7da   :  { %3290 = vtanh.f32 %v1196_v20 }
 0x7e6   :  { %v3289_v21 = vpop.eup %3288 }
 0x7e7   :  { %v3291_v24 = vpop.eup %3290  ;;  %v1203_v25 = vmul.f32 %v3289_v21, %v3289_v21  ;;  %v1199_v29 = vadd.f32 1.0, %v3289_v21 }
 0x7e8   :  { %v1204_v13 = vmul.f32 %v3291_v24, %v3291_v24  ;;  %v1200_v30 = vadd.f32 1.0, %v3291_v24 }
 0x7e9   :  { %v1205_v14 = vadd.f32 1.0, %v1203_v25  ;;  %v1201_v31 = vmul.f32 %v3289_v21, %v1199_v29 }
 0x7ea   :  { %v1206_v28 = vadd.f32 1.0, %v1204_v13  ;;  %v1202_v33 = vmul.f32 %v3291_v24, %v1200_v30 }
 0x7eb   :  { %3292 = vrcp.f32 %v1205_v14 }
 0x7ec   :  { %3294 = vrcp.f32 %v1206_v28 }
 0x7f8   :  { %v3293_v32 = vpop.eup %3292 }
 0x7f9   :  { %v3295_v34 = vpop.eup %3294  ;;  %v3565_v35 = vmul.f32 %v3293_v32, %v1201_v31 }
 0x7fa   :  { %v3567_v36 = vmul.f32 %v3295_v34, %v1202_v33 }
 0x7fb   :  { %v1227_v37 = vadd.f32 %v3565_v35, %v3513_v26  ;;  %v3233_v26 = vpop.permute.xlu1 %3232 }
 0x7fc   :  { %v1228_v38 = vadd.f32 %v3567_v36, %v3515_v27  ;;  %v3234_v41 = vunpack.i.l.bf16 %v3233_v26  ;;  %v3235_v42 = vunpack.i.h.bf16 %v3233_v26 }
 0x7fd   :  { %1229 = vst.msk [vmem:[#allocation2 + $0x8] sm:$0xff] %vm374_vm7, %v1227_v37 }
 0x7fe   :  { %1230 = vst.msk [vmem:[#allocation2 + $0x18] sm:$0xff] %vm374_vm7, %v1228_v38 }
 0x7ff   :  { %v3238_v27 = vpop.permute.xlu1 %3237 }
 0x800   :  { %v3240_v48 = vunpack.i.h.bf16 %v3238_v27  ;;  %v3239_v49 = vunpack.i.l.bf16 %v3238_v27 }
 0x804   :  { %v3575_v39 = vld [vmem:[#allocation2 + $0x8] sm:$0xff] }
 0x805   :  { %v3577_v40 = vld [vmem:[#allocation2 + $0x18] sm:$0xff]  ;;  %1243 = vrot.lane.b32.xlu1 %v3575_v39, %s3343_s19 }
 0x806   :  { %1324 = vrot.lane.b32.xlu0 %v3577_v40, %s3343_s19 }
 0x809   :  { %1480 = vrot.lane.b32.xlu1 %v3577_v40, %s3344_s27 }
 0x80a   :  { %1400 = vrot.lane.b32.xlu0 %v3575_v39, %s3344_s27 }
 0x877   :  { %v1244_v43 = vpop.permute.xlu1 %1243 }
 0x878   :  { %v1325_v45 = vpop.permute.xlu0 %1324  ;;  %v1245_v46 = vsel %vm66_vm5, %v3234_v41, %v1244_v43 }
 0x879   :  { %v1326_v47 = vsel %vm66_vm5, %v3235_v42, %v1325_v45  ;;  %3114 = vmatpush3.msra.mxu0 %v1245_v46 }
 0x87a   :  { %3119 = vmatpush3.msra.mxu1 %v1326_v47  ;;  %3116 = vmatmul.mubr.msk.f32.vlgmr.msra.gmra.mxu0 %vm66_vm5, %v2976_v44 }
 0x87b   :  { %3121 = vmatmul.mubr.msk.f32.vlgmr.msra.gmra.mxu1 %vm66_vm5, %v2976_v44  ;;  %v1481_v50 = vpop.permute.xlu1 %1480  ;;  %3123 = vmatprep.subr.mxu0 %v3337_v0 }
 0x87c   :  { %v1401_v51 = vpop.permute.xlu0 %1400  ;;  %v1482_v52 = vsel %vm1402_vm11, %v3240_v48, %v1481_v50  ;;  %3128 = vmatprep.subr.mxu1 %v3337_v0  ;;  %3125 = vmatprep.mubr.msk.f32.mxu0 %vm3338_vm3, %v3337_v0 }
 0x87d   :  { %v1403_v54 = vsel %vm1402_vm11, %v3239_v49, %v1401_v51  ;;  %3129 = vmatpush3.msra.mxu1 %v1482_v52  ;;  %3130 = vmatprep.mubr.msk.f32.mxu1 %vm3338_vm3, %v3337_v0 }
 0x87e   :  { %3124 = vmatpush3.msra.mxu0 %v1403_v54  ;;  %3138 = vmatprep.subr.mxu1 %v3337_v0 }
 0x87f   :  { %3126 = vmatmul.mubr.msk.f32.vlgmr.msra.gmra.mxu0 %vm66_vm5, %v2975_v53  ;;  %3131 = vmatmul.mubr.msk.f32.vlgmr.msra.gmra.mxu1 %vm66_vm5, %v2975_v53 }
 0x880   :  { %3133 = vmatprep.subr.mxu0 %v3337_v0  ;;  %3135 = vmatprep.mubr.msk.f32.mxu0 %vm3338_vm3, %v3337_v0 }
 0x881   :  { %3140 = vmatprep.mubr.msk.f32.mxu1 %vm3338_vm3, %v3337_v0 }
 0x93a   :  { %v1316_v55 = vpop.f32.mrf.mxu0 }
 0x93b   :  { %v1394_v56 = vpop.f32.mrf.mxu1 }
 0x93c   :  { %v3117_v57 = vpop.f32.mrf.mxu0 }
 0x93d   :  { %v3122_v58 = vpop.f32.mrf.mxu1 }
 0x93f   :  { %v1474_v59 = vpop.f32.mrf.mxu0  ;;  %v1550_v60 = vpop.f32.mrf.mxu1 }
 0x940   :  { %v1475_v61 = vadd.f32 %v1474_v59, %v1316_v55  ;;  %v1551_v62 = vadd.f32 %v1550_v60, %v1394_v56  ;;  %v2982_v59 = vld [vmem:[%s3858_s1 + $0x48] sm:$0xff] }
 0x941   :  { %v3127_v63 = vpop.f32.mrf.mxu0  ;;  %v3132_v1 = vpop.f32.mrf.mxu1 }
 0x942   :  { %v1558_v2 = vsel %vm1554_vm12, %v1551_v62, 0.0  ;;  %v1555_v3 = vsel %vm1554_vm12, %v1475_v61, 0.0 }
 0x943   :  { %1559 = vadd.xlane.f32.xlu1 %v1558_v2  ;;  %1556 = vadd.xlane.f32.xlu0 %v1555_v3 }
 0x954   :  { %1582 = vperm.xlu1 %3209, %v42_v4  }
 0x958   :  { %3242 = vrot.lane.b32.xlu1 %v3337_v0, %s3344_s27 }
 0x95c   :  { %3247 = vrot.lane.b32.xlu1 %v3337_v0, %s3345_s12 }
 0x9cc   :  { %v1560_v5 = vpop.xlane.xlu1 %1559  ;;  %v1557_v6 = vpop.xlane.xlu0 %1556 }
 0x9cd   :  { %v1561_v7 = vadd.f32 %v1560_v5, %v1557_v6  ;;  %v2981_v5 = vld [vmem:[%s3858_s1 + $0x40] sm:$0xff] }
 0x9cf   :  { %v1563_v8 = vmul.f32 0.014705882, %v1561_v7 }
 0x9d0   :  { %v1583_v28 = vpop.permute.xlu1 %1582 }
 0x9d1   :  { %v1564_v9 = vsub.f32 %v1475_v61, %v1563_v8  ;;  %v1565_v10 = vsub.f32 %v1551_v62, %v1563_v8 }
 0x9d3   :  { %v1566_v11 = vmul.f32 %v1564_v9, %v1564_v9  ;;  %v1567_v15 = vmul.f32 %v1565_v10, %v1565_v10 }
 0x9d5   :  { %v1568_v12 = vsel %vm1554_vm12, %v1566_v11, 0.0  ;;  %v1571_v16 = vsel %vm1554_vm12, %v1567_v15, 0.0 }
 0x9d6   :  { %1569 = vadd.xlane.f32.xlu0 %v1568_v12 }
 0x9da   :  { %1572 = vadd.xlane.f32.xlu0 %v1571_v16 }
 0x9f0   :  { %1589 = vperm.xlu0 %3210, %v43_v17  }
 0xa5f   :  { %v1570_v18 = vpop.xlane.xlu0 %1569 }
 0xa63   :  { %v1573_v19 = vpop.xlane.xlu0 %1572 }
 0xa64   :  { %v1574_v20 = vadd.f32 %v1573_v19, %v1570_v18 }
 0xa66   :  { %v1575_v21 = vmul.f32 0.014705882, %v1574_v20 }
 0xa68   :  { %v1576_v24 = vadd.f32 1e-05, %v1575_v21 }
 0xa6a   :  { %3296 = vrsqrt.f32 %v1576_v24 }
 0xa6b   :  { %v1590_v31 = vpop.permute.xlu0 %1589 }
 0xa77   :  { %v3297_v25 = vpop.eup %3296 }
 0xa78   :  { %v1578_v13 = vmul.f32 %v3297_v25, %v1564_v9  ;;  %v1579_v14 = vmul.f32 %v3297_v25, %v1565_v10 }
 0xa7a   :  { %v1585_v29 = vmul.f32 %v1583_v28, %v1578_v13  ;;  %v1586_v30 = vmul.f32 %v1583_v28, %v1579_v14 }
 0xa7c   :  { %v1592_v32 = vadd.f32 %v1590_v31, %v1585_v29  ;;  %v1593_v33 = vadd.f32 %v1590_v31, %v1586_v30 }
 0xa7e   :  { %v1594_v34 = vmul.f32 0.5, %v1592_v32  ;;  %v1595_v37 = vmul.f32 0.5, %v1593_v33  ;;  %v45_v33 = vld [vmem:[%s3859_s2 + $0x48] sm:$0xff] }
 0xa80   :  { %3298 = vtanh.f32 %v1594_v34  ;;  %v3685_v34 = vld [vmem:[#allocation2] sm:$0xff] }
 0xa81   :  { %3300 = vtanh.f32 %v1595_v37  ;;  %v3689_v37 = vpack.i.bf16 %v3685_v34, %v3685_v34 }
 0xa8d   :  { %v3299_v38 = vpop.eup %3298 }
 0xa8e   :  { %v3301_v26 = vpop.eup %3300  ;;  %v1602_v27 = vmul.f32 %v3299_v38, %v3299_v38  ;;  %v1598_v44 = vadd.f32 1.0, %v3299_v38 }
 0xa8f   :  { %v1603_v41 = vmul.f32 %v3301_v26, %v3301_v26  ;;  %v1599_v45 = vadd.f32 1.0, %v3301_v26 }
 0xa90   :  { %v1604_v42 = vadd.f32 1.0, %v1602_v27  ;;  %v1600_v46 = vmul.f32 %v3299_v38, %v1598_v44 }
 0xa91   :  { %v1605_v43 = vadd.f32 1.0, %v1603_v41  ;;  %v1601_v48 = vmul.f32 %v3301_v26, %v1599_v45 }
 0xa92   :  { %3302 = vrcp.f32 %v1604_v42 }
 0xa93   :  { %3304 = vrcp.f32 %v1605_v43 }
 0xa9f   :  { %v3303_v47 = vpop.eup %3302 }
 0xaa0   :  { %v3305_v49 = vpop.eup %3304  ;;  %v3627_v50 = vmul.f32 %v3303_v47, %v1600_v46 }
 0xaa1   :  { %v3629_v51 = vmul.f32 %v3305_v49, %v1601_v48 }
 0xaa2   :  { %v1626_v52 = vadd.f32 %v3627_v50, %v3575_v39  ;;  %v3243_v39 = vpop.permute.xlu1 %3242 }
 0xaa3   :  { %v1627_v53 = vadd.f32 %v3629_v51, %v3577_v40  ;;  %v3244_v56 = vunpack.i.l.bf16 %v3243_v39  ;;  %v3245_v57 = vunpack.i.h.bf16 %v3243_v39 }
 0xaa4   :  { %1628 = vst.msk [vmem:[#allocation2 + $0x8] sm:$0xff] %vm374_vm7, %v1626_v52 }
 0xaa5   :  { %1629 = vst.msk [vmem:[#allocation2 + $0x18] sm:$0xff] %vm374_vm7, %v1627_v53 }
 0xaa6   :  { %v3248_v40 = vpop.permute.xlu1 %3247 }
 0xaa7   :  { %v3250_v63 = vunpack.i.h.bf16 %v3248_v40  ;;  %v3249_v1 = vunpack.i.l.bf16 %v3248_v40 }
 0xaab   :  { %v3637_v54 = vld [vmem:[#allocation2 + $0x8] sm:$0xff] }
 0xaac   :  { %v3639_v55 = vld [vmem:[#allocation2 + $0x18] sm:$0xff]  ;;  %1642 = vrot.lane.b32.xlu1 %v3637_v54, %s3344_s27 }
 0xaad   :  { %1723 = vrot.lane.b32.xlu0 %v3639_v55, %s3344_s27 }
 0xab0   :  { %1879 = vrot.lane.b32.xlu1 %v3639_v55, %s3345_s12 }
 0xab1   :  { %1799 = vrot.lane.b32.xlu0 %v3637_v54, %s3345_s12 }
 0xb1e   :  { %v1643_v58 = vpop.permute.xlu1 %1642 }
 0xb1f   :  { %v1724_v60 = vpop.permute.xlu0 %1723  ;;  %v1644_v61 = vsel %vm1402_vm11, %v3244_v56, %v1643_v58 }
 0xb20   :  { %v1725_v62 = vsel %vm1402_vm11, %v3245_v57, %v1724_v60  ;;  %3134 = vmatpush3.msra.mxu0 %v1644_v61 }
 0xb21   :  { %3139 = vmatpush3.msra.mxu1 %v1725_v62  ;;  %3136 = vmatmul.mubr.msk.f32.vlgmr.msra.gmra.mxu0 %vm66_vm5, %v2982_v59 }
 0xb22   :  { %3141 = vmatmul.mubr.msk.f32.vlgmr.msra.gmra.mxu1 %vm66_vm5, %v2982_v59  ;;  %v1880_v2 = vpop.permute.xlu1 %1879  ;;  %3143 = vmatprep.subr.mxu0 %v3337_v0 }
 0xb23   :  { %v1800_v3 = vpop.permute.xlu0 %1799  ;;  %v1881_v4 = vsel %vm1801_vm13, %v3250_v63, %v1880_v2  ;;  %3148 = vmatprep.subr.mxu1 %v3337_v0  ;;  %3145 = vmatprep.mubr.msk.f32.mxu0 %vm3338_vm3, %v3337_v0 }
 0xb24   :  { %v1802_v6 = vsel %vm1801_vm13, %v3249_v1, %v1800_v3  ;;  %3149 = vmatpush3.msra.mxu1 %v1881_v4  ;;  %3150 = vmatprep.mubr.msk.f32.mxu1 %vm3338_vm3, %v3337_v0 }
 0xb25   :  { %3144 = vmatpush3.msra.mxu0 %v1802_v6  ;;  %3158 = vmatprep.subr.mxu1 %v3337_v0 }
 0xb26   :  { %3146 = vmatmul.mubr.msk.f32.vlgmr.msra.gmra.mxu0 %vm66_vm5, %v2981_v5  ;;  %3151 = vmatmul.mubr.msk.f32.vlgmr.msra.gmra.mxu1 %vm66_vm5, %v2981_v5 }
 0xb27   :  { %3153 = vmatprep.subr.mxu0 %v3337_v0  ;;  %3155 = vmatprep.mubr.msk.f32.mxu0 %vm3338_vm3, %v3337_v0 }
 0xb28   :  { %3160 = vmatprep.mubr.msk.f32.mxu1 %vm3338_vm3, %v3337_v0  ;;  %v44_v0 = vld [vmem:[%s3859_s2 + $0x40] sm:$0xff] }
 0xbe1   :  { %v1715_v7 = vpop.f32.mrf.mxu0 }
 0xbe2   :  { %v1793_v8 = vpop.f32.mrf.mxu1 }
 0xbe3   :  { %v3137_v9 = vpop.f32.mrf.mxu0 }
 0xbe4   :  { %v3142_v10 = vpop.f32.mrf.mxu1 }
 0xbe6   :  { %v1873_v11 = vpop.f32.mrf.mxu0  ;;  %v1949_v12 = vpop.f32.mrf.mxu1 }
 0xbe7   :  { %v1874_v15 = vadd.f32 %v1873_v11, %v1715_v7  ;;  %v1950_v16 = vadd.f32 %v1949_v12, %v1793_v8 }
 0xbe8   :  { %v3147_v17 = vpop.f32.mrf.mxu0  ;;  %v3152_v18 = vpop.f32.mrf.mxu1 }
 0xbe9   :  { %v1957_v19 = vsel %vm1953_vm14, %v1950_v16, 0.0  ;;  %v1954_v20 = vsel %vm1953_vm14, %v1874_v15, 0.0 }
 0xbea   :  { %1958 = vadd.xlane.f32.xlu1 %v1957_v19  ;;  %1955 = vadd.xlane.f32.xlu0 %v1954_v20 }
 0xbfb   :  { %1981 = vperm.xlu1 %3209, %v44_v0  }
 0xbff   :  { %3252 = vrot.lane.b32.xlu1 %v3689_v37, %s3345_s12 }
 0xc03   :  { %3257 = vrot.lane.b32.xlu1 %v3689_v37, %s3346_s21 }
 0xc73   :  { %v1959_v21 = vpop.xlane.xlu1 %1958  ;;  %v1956_v24 = vpop.xlane.xlu0 %1955 }
 0xc74   :  { %v1960_v25 = vadd.f32 %v1959_v21, %v1956_v24 }
 0xc76   :  { %v1962_v13 = vmul.f32 0.01, %v1960_v25 }
 0xc77   :  { %v1982_v46 = vpop.permute.xlu1 %1981 }
 0xc78   :  { %v1963_v14 = vsub.f32 %v1874_v15, %v1962_v13  ;;  %v1964_v28 = vsub.f32 %v1950_v16, %v1962_v13  ;;  %v2988_v16 = vld [vmem:[%s3858_s1 + $0x58] sm:$0xff]  ;;  %v2987_v13 = vld [vmem:[%s3858_s1 + $0x50] sm:$0xff] }
 0xc7a   :  { %v1965_v29 = vmul.f32 %v1963_v14, %v1963_v14  ;;  %v1966_v31 = vmul.f32 %v1964_v28, %v1964_v28 }
 0xc7c   :  { %v1967_v30 = vsel %vm1953_vm14, %v1965_v29, 0.0  ;;  %v1970_v32 = vsel %vm1953_vm14, %v1966_v31, 0.0 }
 0xc7d   :  { %1968 = vadd.xlane.f32.xlu0 %v1967_v30 }
 0xc81   :  { %1971 = vadd.xlane.f32.xlu0 %v1970_v32 }
 0xc97   :  { %1988 = vperm.xlu0 %3210, %v45_v33  }
 0xd06   :  { %v1969_v38 = vpop.xlane.xlu0 %1968 }
 0xd0a   :  { %v1972_v26 = vpop.xlane.xlu0 %1971 }
 0xd0b   :  { %v1973_v27 = vadd.f32 %v1972_v26, %v1969_v38 }
 0xd0d   :  { %v1974_v41 = vmul.f32 0.01, %v1973_v27 }
 0xd0f   :  { %v1975_v42 = vadd.f32 1e-05, %v1974_v41 }
 0xd11   :  { %3306 = vrsqrt.f32 %v1975_v42 }
 0xd12   :  { %v1989_v49 = vpop.permute.xlu0 %1988 }
 0xd1e   :  { %v3307_v43 = vpop.eup %3306 }
 0xd1f   :  { %v1977_v44 = vmul.f32 %v3307_v43, %v1963_v14  ;;  %v1978_v45 = vmul.f32 %v3307_v43, %v1964_v28 }
 0xd21   :  { %v1984_v47 = vmul.f32 %v1982_v46, %v1977_v44  ;;  %v1985_v48 = vmul.f32 %v1982_v46, %v1978_v45  ;;  %v46_v44 = vld [vmem:[%s3859_s2 + $0x50] sm:$0xff] }
 0xd23   :  { %v1991_v52 = vadd.f32 %v1989_v49, %v1984_v47  ;;  %v1992_v53 = vadd.f32 %v1989_v49, %v1985_v48 }
 0xd25   :  { %v1993_v39 = vmul.f32 0.5, %v1991_v52  ;;  %v1994_v40 = vmul.f32 0.5, %v1992_v53 }
 0xd27   :  { %3308 = vtanh.f32 %v1993_v39 }
 0xd28   :  { %3310 = vtanh.f32 %v1994_v40 }
 0xd34   :  { %v3309_v56 = vpop.eup %3308 }
 0xd35   :  { %v3311_v57 = vpop.eup %3310  ;;  %v2001_v58 = vmul.f32 %v3309_v56, %v3309_v56  ;;  %v1997_v62 = vadd.f32 1.0, %v3309_v56 }
 0xd36   :  { %v2002_v59 = vmul.f32 %v3311_v57, %v3311_v57  ;;  %v1998_v63 = vadd.f32 1.0, %v3311_v57 }
 0xd37   :  { %v2003_v60 = vadd.f32 1.0, %v2001_v58  ;;  %v1999_v1 = vmul.f32 %v3309_v56, %v1997_v62 }
 0xd38   :  { %v2004_v61 = vadd.f32 1.0, %v2002_v59  ;;  %v2000_v3 = vmul.f32 %v3311_v57, %v1998_v63  ;;  %v47_v57 = vld [vmem:[%s3859_s2 + $0x58] sm:$0xff] }
 0xd39   :  { %3312 = vrcp.f32 %v2003_v60 }
 0xd3a   :  { %3314 = vrcp.f32 %v2004_v61 }
 0xd46   :  { %v3313_v2 = vpop.eup %3312 }
 0xd47   :  { %v3315_v4 = vpop.eup %3314  ;;  %v3695_v5 = vmul.f32 %v3313_v2, %v1999_v1 }
 0xd48   :  { %v3697_v6 = vmul.f32 %v3315_v4, %v2000_v3 }
 0xd49   :  { %v2025_v7 = vadd.f32 %v3695_v5, %v3637_v54  ;;  %v3253_v54 = vpop.permute.xlu1 %3252 }
 0xd4a   :  { %v2026_v8 = vadd.f32 %v3697_v6, %v3639_v55  ;;  %v3254_v11 = vunpack.i.l.bf16 %v3253_v54  ;;  %v3255_v12 = vunpack.i.h.bf16 %v3253_v54 }
 0xd4b   :  { %2027 = vst.msk [vmem:[#allocation2 + $0x8] sm:$0xff] %vm374_vm7, %v2025_v7 }
 0xd4c   :  { %2028 = vst.msk [vmem:[#allocation2 + $0x18] sm:$0xff] %vm374_vm7, %v2026_v8 }
 0xd4d   :  { %v3258_v55 = vpop.permute.xlu1 %3257 }
 0xd4e   :  { %v3260_v20 = vunpack.i.h.bf16 %v3258_v55  ;;  %v3259_v0 = vunpack.i.l.bf16 %v3258_v55 }
 0xd52   :  { %v3705_v9 = vld [vmem:[#allocation2 + $0x8] sm:$0xff] }
 0xd53   :  { %v3707_v10 = vld [vmem:[#allocation2 + $0x18] sm:$0xff]  ;;  %2041 = vrot.lane.b32.xlu1 %v3705_v9, %s3345_s12 }
 0xd54   :  { %2122 = vrot.lane.b32.xlu0 %v3707_v10, %s3345_s12 }
 0xd57   :  { %2278 = vrot.lane.b32.xlu1 %v3707_v10, %s3346_s21 }
 0xd58   :  { %2198 = vrot.lane.b32.xlu0 %v3705_v9, %s3346_s21 }
 0xdc5   :  { %v2042_v15 = vpop.permute.xlu1 %2041 }
 0xdc6   :  { %v2123_v17 = vpop.permute.xlu0 %2122  ;;  %v2043_v18 = vsel %vm1801_vm13, %v3254_v11, %v2042_v15 }
 0xdc7   :  { %v2124_v19 = vsel %vm1801_vm13, %v3255_v12, %v2123_v17  ;;  %3154 = vmatpush3.msra.mxu0 %v2043_v18 }
 0xdc8   :  { %3159 = vmatpush3.msra.mxu1 %v2124_v19  ;;  %3156 = vmatmul.mubr.msk.f32.vlgmr.msra.gmra.mxu0 %vm66_vm5, %v2988_v16 }
 0xdc9   :  { %3161 = vmatmul.mubr.msk.f32.vlgmr.msra.gmra.mxu1 %vm66_vm5, %v2988_v16  ;;  %v2279_v21 = vpop.permute.xlu1 %2278  ;;  %3163 = vmatprep.subr.mxu0 %v3685_v34 }
 0xdca   :  { %v2199_v24 = vpop.permute.xlu0 %2198  ;;  %v2280_v25 = vsel %vm2200_vm15, %v3260_v20, %v2279_v21  ;;  %3168 = vmatprep.subr.mxu1 %v3685_v34  ;;  %3165 = vmatprep.mubr.msk.f32.mxu0 %vm3338_vm3, %v3685_v34 }
 0xdcb   :  { %v2201_v14 = vsel %vm2200_vm15, %v3259_v0, %v2199_v24  ;;  %3169 = vmatpush3.msra.mxu1 %v2280_v25  ;;  %3170 = vmatprep.mubr.msk.f32.mxu1 %vm3338_vm3, %v3685_v34 }
 0xdcc   :  { %3164 = vmatpush3.msra.mxu0 %v2201_v14 }
 0xdcd   :  { %3166 = vmatmul.mubr.msk.f32.vlgmr.msra.gmra.mxu0 %vm66_vm5, %v2987_v13  ;;  %3171 = vmatmul.mubr.msk.f32.vlgmr.msra.gmra.mxu1 %vm66_vm5, %v2987_v13 }
 0xdce   :  { %2512 = vmatprep.mubr.f32.mxu0 %v3685_v34  ;;  %2592 = vmatprep.mubr.f32.mxu1 %v3685_v34 }
 0xe88   :  { %v2114_v28 = vpop.f32.mrf.mxu0 }
 0xe89   :  { %v2192_v29 = vpop.f32.mrf.mxu1 }
 0xe8a   :  { %v3157_v30 = vpop.f32.mrf.mxu0 }
 0xe8b   :  { %v3162_v31 = vpop.f32.mrf.mxu1 }
 0xe8d   :  { %v2272_v32 = vpop.f32.mrf.mxu0  ;;  %v2348_v33 = vpop.f32.mrf.mxu1 }
 0xe8e   :  { %v2273_v38 = vadd.f32 %v2272_v32, %v2114_v28  ;;  %v2349_v26 = vadd.f32 %v2348_v33, %v2192_v29 }
 0xe8f   :  { %v3167_v27 = vpop.f32.mrf.mxu0  ;;  %v3172_v41 = vpop.f32.mrf.mxu1 }
 0xe90   :  { %v2356_v42 = vsel %vm2352_vm0, %v2349_v26, 0.0  ;;  %v2353_v43 = vsel %vm2352_vm0, %v2273_v38, 0.0 }
 0xe91   :  { %2357 = vadd.xlane.f32.xlu1 %v2356_v42  ;;  %2354 = vadd.xlane.f32.xlu0 %v2353_v43  ;;  %v2993_v43 = vld [vmem:[%s3858_s1 + $0x60] sm:$0xff] }
 0xea2   :  { %2380 = vperm.xlu1 %3209, %v46_v44  }
 0xea6   :  { %3262 = vrot.lane.b32.xlu1 %v3689_v37, %s3346_s21 }
 0xf1a   :  { %v2358_v45 = vpop.xlane.xlu1 %2357  ;;  %v2355_v46 = vpop.xlane.xlu0 %2354 }
 0xf1b   :  { %v2359_v47 = vadd.f32 %v2358_v45, %v2355_v46 }
 0xf1d   :  { %v2361_v48 = vmul.f32 0.0060975607, %v2359_v47 }
 0xf1e   :  { %v2381_v2 = vpop.permute.xlu1 %2380 }
 0xf1f   :  { %v2362_v49 = vsub.f32 %v2273_v38, %v2361_v48  ;;  %v2363_v52 = vsub.f32 %v2349_v26, %v2361_v48 }
 0xf21   :  { %v2364_v53 = vmul.f32 %v2362_v49, %v2362_v49  ;;  %v2365_v40 = vmul.f32 %v2363_v52, %v2363_v52 }
 0xf22   :  { %v3263_v33 = vpop.permute.xlu1 %3262 }
 0xf23   :  { %v2366_v39 = vsel %vm2352_vm0, %v2364_v53, 0.0  ;;  %v2369_v56 = vsel %vm2352_vm0, %v2365_v40, 0.0  ;;  %v3264_v38 = vunpack.i.l.bf16 %v3263_v33  ;;  %v3265_v26 = vunpack.i.h.bf16 %v3263_v33 }
 0xf24   :  { %2367 = vadd.xlane.f32.xlu0 %v2366_v39 }
 0xf28   :  { %2370 = vadd.xlane.f32.xlu0 %v2369_v56 }
 0xf3e   :  { %2387 = vperm.xlu0 %3210, %v47_v57  }
 0xfad   :  { %v2368_v37 = vpop.xlane.xlu0 %2367 }
 0xfb1   :  { %v2371_v58 = vpop.xlane.xlu0 %2370 }
 0xfb2   :  { %v2372_v59 = vadd.f32 %v2371_v58, %v2368_v37 }
 0xfb4   :  { %v2373_v60 = vmul.f32 0.0060975607, %v2372_v59 }
 0xfb6   :  { %v2374_v61 = vadd.f32 1e-05, %v2373_v60 }
 0xfb8   :  { %3316 = vrsqrt.f32 %v2374_v61  ;;  %v48_v61 = vld [vmem:[%s3859_s2 + $0x60] sm:$0xff] }
 0xfb9   :  { %v2388_v7 = vpop.permute.xlu0 %2387 }
 0xfc5   :  { %v3317_v62 = vpop.eup %3316 }
 0xfc6   :  { %v2376_v63 = vmul.f32 %v3317_v62, %v2362_v49  ;;  %v2377_v1 = vmul.f32 %v3317_v62, %v2363_v52 }
 0xfc8   :  { %v2383_v3 = vmul.f32 %v2381_v2, %v2376_v63  ;;  %v2384_v4 = vmul.f32 %v2381_v2, %v2377_v1 }
 0xfca   :  { %v2390_v8 = vadd.f32 %v2388_v7, %v2383_v3  ;;  %v2391_v54 = vadd.f32 %v2388_v7, %v2384_v4  ;;  %v814_v3 = vld [vmem:[#allocation3 + $0x8] sm:$0xff]  ;;  %v813_v7 = vld [vmem:[#allocation3] sm:$0xff] }
 0xfcc   :  { %v2392_v55 = vmul.f32 0.5, %v2390_v8  ;;  %v2393_v11 = vmul.f32 0.5, %v2391_v54 }
 0xfce   :  { %3318 = vtanh.f32 %v2392_v55 }
 0xfcf   :  { %3320 = vtanh.f32 %v2393_v11 }
 0xfdb   :  { %v3319_v12 = vpop.eup %3318 }
 0xfdc   :  { %v3321_v15 = vpop.eup %3320  ;;  %v2400_v16 = vmul.f32 %v3319_v12, %v3319_v12  ;;  %v2396_v20 = vadd.f32 1.0, %v3319_v12 }
 0xfdd   :  { %v2401_v17 = vmul.f32 %v3321_v15, %v3321_v15  ;;  %v2397_v0 = vadd.f32 1.0, %v3321_v15 }
 0xfde   :  { %v2402_v18 = vadd.f32 1.0, %v2400_v16  ;;  %v2398_v21 = vmul.f32 %v3319_v12, %v2396_v20 }
 0xfdf   :  { %v2403_v19 = vadd.f32 1.0, %v2401_v17  ;;  %v2399_v25 = vmul.f32 %v3321_v15, %v2397_v0 }
 0xfe0   :  { %3322 = vrcp.f32 %v2402_v18 }
 0xfe1   :  { %3324 = vrcp.f32 %v2403_v19 }
 0xfed   :  { %v3323_v24 = vpop.eup %3322 }
 0xfee   :  { %v3325_v13 = vpop.eup %3324  ;;  %v3751_v14 = vmul.f32 %v3323_v24, %v2398_v21  ;;  %v49_v24 = vld [vmem:[%s3859_s2 + $0x68] sm:$0xff] }
 0xfef   :  { %v3753_v28 = vmul.f32 %v3325_v13, %v2399_v25 }
 0xff0   :  { %v2424_v29 = vadd.f32 %v3751_v14, %v3705_v9  ;;  %v2994_v9 = vld [vmem:[%s3858_s1 + $0x68] sm:$0xff]  ;;  %s3347_s1 = smov 124  }
 0xff1   :  { %v2425_v30 = vadd.f32 %v3753_v28, %v3707_v10 }
 0xff2   :  { %2426 = vst.msk [vmem:[#allocation2 + $0x8] sm:$0xff] %vm374_vm7, %v2424_v29 }
 0xff3   :  { %2427 = vst.msk [vmem:[#allocation2 + $0x18] sm:$0xff] %vm374_vm7, %v2425_v30 }
 0xff9   :  { %v2429_v31 = vld [vmem:[#allocation2 + $0x8] sm:$0xff] }
 0xffa   :  { %v2431_v32 = vld [vmem:[#allocation2 + $0x18] sm:$0xff]  ;;  %2440 = vrot.lane.b32.xlu1 %v2429_v31, %s3346_s21 }
 0xffb   :  { %2523 = vrot.lane.b32.xlu0 %v2431_v32, %s3346_s21 }
0x106c   :  { %v2441_v27 = vpop.permute.xlu1 %2440 }
0x106d   :  { %v2524_v41 = vpop.permute.xlu0 %2523  ;;  %v2442_v10 = vsel %vm2200_vm15, %v3264_v38, %v2441_v27  ;;  %2478 = vmatprep.subr.mxu0 %v2441_v27 }
0x106e   :  { %v2525_v42 = vsel %vm2200_vm15, %v3265_v26, %v2524_v41  ;;  %2558 = vmatprep.subr.mxu1 %v2524_v41  ;;  %2479 = vmatpush1.msra.mxu0 %v2442_v10 }
0x106f   :  { %2559 = vmatpush1.msra.mxu1 %v2525_v42  ;;  %2995 = vmatmul.mubr.msk.f32.vlgmr.msra.gmra.mxu0 %vm66_vm5, %v2994_v9 }
0x1070   :  { %2996 = vmatmul.mubr.msk.f32.vlgmr.msra.gmra.mxu1 %vm66_vm5, %v2994_v9  ;;  %2632 = vmatprep.subr.mxu0 %v2429_v31 }
0x1071   :  { %2703 = vmatprep.subr.mxu1 %v2431_v32  ;;  %2633 = vmatpush1.msra.mxu0 %v3685_v34 }
0x1072   :  { %2666 = vmatprep.mubr.f32.mxu0 %v3685_v34  ;;  %2704 = vmatpush1.msra.mxu1 %v3685_v34 }
0x1073   :  { %2737 = vmatprep.mubr.f32.mxu1 %v3685_v34  ;;  %2997 = vmatmul.mubr.msk.f32.vlgmr.msra.gmra.mxu0 %vm66_vm5, %v2993_v43 }
0x1074   :  { %2998 = vmatmul.mubr.msk.f32.vlgmr.msra.gmra.mxu1 %vm66_vm5, %v2993_v43  ;;  %3173 = vmatprep.subr.mxu0 %v3685_v34 }
0x1075   :  { %3179 = vmatprep.mubr.msk.f32.mxu0 %vm3338_vm3, %v3685_v34  ;;  %vm2952_vm3 = vcmask 1024  }
0x112f   :  { %v2514_v44 = vpop.f32.mrf.mxu0 }
0x1130   :  { %v2594_v45 = vpop.f32.mrf.mxu1 }
0x1131   :  { %v2516_v46 = vpop.f32.mrf.mxu0 }
0x1132   :  { %v2596_v47 = vpop.f32.mrf.mxu1 }
0x1133   :  { %v2668_v48 = vpop.f32.mrf.mxu0 }
0x1134   :  { %v2739_v49 = vpop.f32.mrf.mxu1  ;;  %v2669_v40 = vadd.f32 %v2668_v48, %v2514_v44 }
0x1135   :  { %v2670_v52 = vpop.f32.mrf.mxu0  ;;  %v2740_v57 = vadd.f32 %v2739_v49, %v2594_v45 }
0x1136   :  { %v2671_v53 = vadd.f32 %v2670_v52, %v2516_v46  ;;  %v2741_v39 = vpop.f32.mrf.mxu1 }
0x1137   :  { %v2742_v56 = vadd.f32 %v2741_v39, %v2596_v47 }
0x1138   :  { %v2744_v37 = vsel %vm374_vm7, %v2671_v53, 0.0 }
0x1139   :  { %v2748_v58 = vsel %vm374_vm7, %v2742_v56, 0.0  ;;  %v2745_v59 = vadd.f32 %v2744_v37, %v2669_v40 }
0x113a   :  { %v2749_v60 = vadd.f32 %v2748_v58, %v2740_v57 }
0x113b   :  { %2746 = vadd.xlane.f32.xlu1 %v2745_v59 }
0x113c   :  { %2750 = vadd.xlane.f32.xlu0 %v2749_v60 }
0x114c   :  { %819 = vrot.lane.b32.xlu1 %v3505_v23, %s3347_s1 }
0x1150   :  { %2779 = vperm.xlu1 %3209, %v48_v61  }
0x1152   :  { %817 = vrot.lane.b32.xlu0 %v3503_v22, %s3347_s1 }
0x11c4   :  { %v2747_v62 = vpop.xlane.xlu1 %2746 }
0x11c5   :  { %v2751_v63 = vpop.xlane.xlu0 %2750 }
0x11c6   :  { %v2752_v1 = vadd.f32 %v2751_v63, %v2747_v62 }
0x11c8   :  { %v2754_v2 = vmul.f32 0.0034246575, %v2752_v1  ;;  %v820_v4 = vpop.permute.xlu1 %819 }
0x11c9   :  { %v818_v8 = vpop.permute.xlu0 %817  ;;  %v824_v54 = vadd.f32 %v820_v4, %v814_v3 }
0x11ca   :  { %v823_v55 = vadd.f32 %v818_v8, %v813_v7  ;;  %v2757_v11 = vsub.f32 %v2740_v57, %v2754_v2  ;;  %v3789_v12 = vsub.f32 %v2742_v56, %v2754_v2  ;;  %v2755_v23 = vsub.f32 %v2669_v40, %v2754_v2 }
0x11cb   :  { %826 = vst.msk [vmem:[#allocation3 + $0x8] sm:$0xff] %vm374_vm7, %v824_v54  ;;  %v3792_v15 = vsub.f32 %v2671_v53, %v2754_v2 }
0x11cc   :  { %825 = vst.msk [vmem:[#allocation3] sm:$0xff] %vm374_vm7, %v823_v55  ;;  %v2761_v22 = vmul.f32 %v2757_v11, %v2757_v11  ;;  %v2762_v16 = vmul.f32 %v3789_v12, %v3789_v12  ;;  %v2759_v17 = vmul.f32 %v2755_v23, %v2755_v23  ;;  %v2780_v25 = vpop.permute.xlu1 %2779 }
0x11cd   :  { %v2760_v18 = vmul.f32 %v3792_v15, %v3792_v15 }
0x11ce   :  { %v2767_v19 = vsel %vm374_vm7, %v2762_v16, 0.0 }
0x11cf   :  { %v2768_v20 = vadd.f32 %v2767_v19, %v2761_v22  ;;  %v2763_v0 = vsel %vm374_vm7, %v2760_v18, 0.0 }
0x11d0   :  { %v2764_v21 = vadd.f32 %v2763_v0, %v2759_v17 }
0x11d1   :  { %2769 = vadd.xlane.f32.xlu1 %v2768_v20 }
0x11d2   :  { %2765 = vadd.xlane.f32.xlu0 %v2764_v21  ;;  %v1212_v27 = vld [vmem:[#allocation3 + $0x8] sm:$0xff] }
0x11d3   :  { %v1211_v30 = vld [vmem:[#allocation3] sm:$0xff] }
0x11e2   :  { %1215 = vrot.lane.b32.xlu1 %v3565_v35, %s3348_s11  ;;  %v2816_v35 = vld [vmem:[%s3860_s5] sm:$0xff] }
0x11e6   :  { %1614 = vrot.lane.b32.xlu1 %v3627_v50, %s3349_s14  ;;  %v3820_v50 = vld [vmem:[%s3861_s4] sm:$0x7] }
0x11e8   :  { %2786 = vperm.xlu0 %3210, %v49_v24  }
0x11ea   :  { %2013 = vrot.lane.b32.xlu1 %v3695_v5, %s3350_s15  ;;  %v2849_v5 = vld [vmem:[%s3862_s3 + $0x10] sm:$0x3] }
0x11eb   :  { %3174 = vmatpush3.msk.msra.mxu0 %vm2860_vm1, %v2849_v5 }
0x11ec   :  { %1217 = vrot.lane.b32.xlu0 %v3567_v36, %s3348_s11  ;;  %v2839_v36 = vrot.slane %v3820_v50, 2  ;;  %3175 = vmatprep.subr.mxu0 %v3685_v34 }
0x11ee   :  { %2412 = vrot.lane.b32.xlu1 %v3751_v14, %s3346_s21  ;;  %3182 = vpush %v2839_v36 }
0x11f0   :  { %1616 = vrot.lane.b32.xlu0 %v3629_v51, %s3349_s14  ;;  %v2848_v51 = vld [vmem:[%s3862_s3 + $0x8] sm:$0xff] }
0x11f1   :  { %3176 = vmatpush3.msra.mxu0 %v2848_v51 }
0x11f2   :  { %2819 = vperm.xlu1 %3209, %v2816_v35   ;;  %3177 = vmatprep.subr.mxu0 %v3685_v34 }
0x11f4   :  { %2015 = vrot.lane.b32.xlu0 %v3697_v6, %s3350_s15  ;;  %v2847_v6 = vld [vmem:[%s3862_s3] sm:$0xff] }
0x11f5   :  { %3178 = vmatpush3.msra.mxu0 %v2847_v6 }
0x11f8   :  { %2414 = vrot.lane.b32.xlu0 %v3753_v28, %s3346_s21 }
0x121f   :  { %s3183_s3 = spop %3182 }
0x125a   :  { %v2770_v13 = vpop.xlane.xlu1 %2769 }
0x125b   :  { %v2766_v14 = vpop.xlane.xlu0 %2765 }
0x125c   :  { %v2771_v28 = vadd.f32 %v2770_v13, %v2766_v14 }
0x125e   :  { %v2772_v29 = vmul.f32 0.0034246575, %v2771_v28  ;;  %v1216_v31 = vpop.permute.xlu1 %1215 }
0x125f   :  { %v1221_v32 = vadd.f32 %v1216_v31, %v1211_v30 }
0x1260   :  { %v2773_v33 = vadd.f32 1e-05, %v2772_v29 }
0x1261   :  { %1223 = vst.msk [vmem:[#allocation3] sm:$0xff] %vm374_vm7, %v1221_v32 }
0x1262   :  { %3326 = vrsqrt.f32 %v2773_v33  ;;  %v1615_v41 = vpop.permute.xlu1 %1614 }
0x1263   :  { %v2787_v38 = vpop.permute.xlu0 %2786 }
0x1266   :  { %v2014_v52 = vpop.permute.xlu1 %2013 }
0x1267   :  { %v1218_v26 = vpop.permute.xlu0 %1217 }
0x1268   :  { %v1610_v9 = vld [vmem:[#allocation3] sm:$0xff]  ;;  %v1222_v10 = vadd.f32 %v1218_v26, %v1212_v27 }
0x1269   :  { %v1620_v34 = vadd.f32 %v1615_v41, %v1610_v9  ;;  %v2841_v9 = vstv %s3183_s3 }
0x126a   :  { %1224 = vst.msk [vmem:[#allocation3 + $0x8] sm:$0xff] %vm374_vm7, %v1222_v10  ;;  %v2413_v61 = vpop.permute.xlu1 %2412 }
0x126b   :  { %1622 = vst.msk [vmem:[#allocation3] sm:$0xff] %vm374_vm7, %v1620_v34  ;;  %v1617_v45 = vpop.permute.xlu0 %1616 }
0x126e   :  { %v2820_v36 = vpop.permute.xlu1 %2819 }
0x126f   :  { %v3327_v42 = vpop.eup %3326  ;;  %v2016_v58 = vpop.permute.xlu0 %2015 }
0x1270   :  { %v2775_v43 = vmul.f32 %v3327_v42, %v3792_v15  ;;  %v2776_v44 = vmul.f32 %v3327_v42, %v3789_v12 }
0x1271   :  { %v1611_v46 = vld [vmem:[#allocation3 + $0x8] sm:$0xff] }
0x1272   :  { %v2782_v47 = vmul.f32 %v2780_v25, %v2775_v43  ;;  %v2783_v48 = vmul.f32 %v2780_v25, %v2776_v44  ;;  %v2009_v49 = vld [vmem:[#allocation3] sm:$0xff]  ;;  %v1621_v53 = vadd.f32 %v1617_v45, %v1611_v46  ;;  %v2850_v46 = vlaneseq }
0x1273   :  { %v2019_v39 = vadd.f32 %v2014_v52, %v2009_v49  ;;  %v2415_v2 = vpop.permute.xlu0 %2414 }
0x1274   :  { %v2789_v40 = vadd.f32 %v2787_v38, %v2782_v47  ;;  %v2790_v56 = vadd.f32 %v2787_v38, %v2783_v48  ;;  %1623 = vst.msk [vmem:[#allocation3 + $0x8] sm:$0xff] %vm374_vm7, %v1621_v53  ;;  %v2851_v47 = vshrl.u32 %v2850_v46, 7 }
0x1275   :  { %2021 = vst.msk [vmem:[#allocation3] sm:$0xff] %vm374_vm7, %v2019_v39 }
0x1276   :  { %v2791_v57 = vmul.f32 0.5, %v2789_v40  ;;  %v2792_v37 = vmul.f32 0.5, %v2790_v56  ;;  %v2852_v48 = vsub.s32 0, %v2851_v47  ;;  %v2937_v52 = vsub.s32 1, %v2851_v47 }
0x1278   :  { %3328 = vtanh.f32 %v2791_v57  ;;  %v2853_v49 = vrot.slane %v3820_v50, %v2852_v48  ;;  %v2938_v40 = vrot.slane %v3820_v50, %v2937_v52 }
0x1279   :  { %3330 = vtanh.f32 %v2792_v37 }
0x127b   :  { %v2010_v59 = vld [vmem:[#allocation3 + $0x8] sm:$0xff] }
0x127c   :  { %v2408_v60 = vld [vmem:[#allocation3] sm:$0xff]  ;;  %v2020_v62 = vadd.f32 %v2016_v58, %v2010_v59  ;;  %v2945_v59 = vsub.s32 2, %v2851_v47 }
0x127d   :  { %v2418_v63 = vadd.f32 %v2413_v61, %v2408_v60 }
0x127e   :  { %2022 = vst.msk [vmem:[#allocation3 + $0x8] sm:$0xff] %vm374_vm7, %v2020_v62  ;;  %v2946_v60 = vrot.slane %v3820_v50, %v2945_v59 }
0x127f   :  { %2420 = vst.msk [vmem:[#allocation3] sm:$0xff] %vm374_vm7, %v2418_v63 }
0x1285   :  { %v3329_v1 = vpop.eup %3328  ;;  %v2409_v3 = vld [vmem:[#allocation3 + $0x8] sm:$0xff] }
0x1286   :  { %v3331_v4 = vpop.eup %3330  ;;  %v2799_v7 = vmul.f32 %v3329_v1, %v3329_v1  ;;  %v2419_v8 = vadd.f32 %v2415_v2, %v2409_v3  ;;  %v2795_v12 = vadd.f32 1.0, %v3329_v1  ;;  %v2807_v19 = vld [vmem:[#allocation3] sm:$0xff] }
0x1287   :  { %v2800_v54 = vmul.f32 %v3331_v4, %v3331_v4  ;;  %v2796_v23 = vadd.f32 1.0, %v3331_v4 }
0x1288   :  { %v2801_v55 = vadd.f32 1.0, %v2799_v7  ;;  %2421 = vst.msk [vmem:[#allocation3 + $0x8] sm:$0xff] %vm374_vm7, %v2419_v8  ;;  %v2797_v15 = vmul.f32 %v3329_v1, %v2795_v12 }
0x1289   :  { %v2802_v11 = vadd.f32 1.0, %v2800_v54  ;;  %v2798_v16 = vmul.f32 %v3331_v4, %v2796_v23 }
0x128a   :  { %3332 = vrcp.f32 %v2801_v55 }
0x128b   :  { %3334 = vrcp.f32 %v2802_v11 }
0x128f   :  { %v2808_v21 = vld [vmem:[#allocation3 + $0x8] sm:$0xff] }
0x1297   :  { %v3333_v22 = vpop.eup %3332 }
0x1298   :  { %v3335_v17 = vpop.eup %3334  ;;  %v2804_v18 = vmul.f32 %v3333_v22, %v2797_v15 }
0x1299   :  { %v2806_v20 = vmul.f32 %v3335_v17, %v2798_v16 }
0x129a   :  { %v2809_v0 = vadd.f32 %v2807_v19, %v2804_v18 }
0x129b   :  { %v2810_v24 = vadd.f32 %v2808_v21, %v2806_v20 }
0x129c   :  { %2811 = vst.msk [vmem:[#allocation3] sm:$0xff] %vm374_vm7, %v2809_v0 }
0x129d   :  { %2812 = vst.msk [vmem:[#allocation3 + $0x8] sm:$0xff] %vm374_vm7, %v2810_v24 }
0x12a3   :  { %v2814_v35 = vld [vmem:[#allocation3] sm:$0xff] }
0x12a4   :  { %v2822_v5 = vmul.f32 %v2820_v36, %v2814_v35  ;;  %v2815_v51 = vld [vmem:[#allocation3 + $0x8] sm:$0xff] }
0x12a5   :  { %v2823_v6 = vmul.f32 %v2820_v36, %v2815_v51 }
0x12a6   :  { %v2824_v25 = vsel %vm374_vm7, %v2822_v5, 0.0 }
0x12a7   :  { %v2825_v13 = vrot.slane %v2824_v25, 4  ;;  %v2831_v14 = vsel %vm374_vm7, %v2823_v6, 0.0 }
0x12a8   :  { %v2832_v28 = vrot.slane %v2831_v14, 4 }
0x12a9   :  { %v2826_v29 = vadd.f32 %v2825_v13, %v2824_v25 }
0x12aa   :  { %v2833_v30 = vadd.f32 %v2832_v28, %v2831_v14 }
0x12ab   :  { %v2827_v31 = vrot.slane %v2826_v29, 2 }
0x12ac   :  { %v2834_v32 = vrot.slane %v2833_v30, 2 }
0x12ad   :  { %v2828_v33 = vadd.f32 %v2827_v31, %v2826_v29 }
0x12ae   :  { %v2835_v38 = vadd.f32 %v2834_v32, %v2833_v30 }
0x12af   :  { %v2829_v26 = vrot.slane %v2828_v33, 1 }
0x12b0   :  { %v2836_v27 = vrot.slane %v2835_v38, 1 }
0x12b1   :  { %v2830_v41 = vadd.f32 %v2829_v26, %v2828_v33 }
0x12b2   :  { %v2837_v10 = vadd.f32 %v2836_v27, %v2835_v38 }
0x12b3   :  { %v2843_v34 = vadd.f32 %v2841_v9, %v2830_v41 }
0x12b4   :  { %v2844_v42 = vadd.f32 %v2841_v9, %v2837_v10 }
0x12b5   :  { %v2845_v43 = vmax.f32 %v2843_v34, 0.0 }
0x12b6   :  { %v2846_v44 = vmax.f32 %v2844_v42, 0.0 }
0x12b8   :  { %v2857_v45 = vsel %vm2856_vm2, %v2846_v44, %v2845_v43 }
0x12b9   :  { %3180 = vmatmul.mubr.msk.f32.vlgmr.msra.gmra.mxu0 %vm374_vm7, %v2857_v45 }
0x1379   :  { %v2930_v53 = vpop.f32.mrf.mxu0 }
0x137a   :  { %v2931_v39 = vadd.f32 %v2930_v53, %v2853_v49 }
0x137b   :  { %v3181_v56 = vpop.f32.mrf.mxu0 }
0x137c   :  { %v2934_v57 = vmax.f32 %v2931_v39, 0.0 }
0x137e   :  { %v2939_v37 = vmul.f32 %v2938_v40, %v2934_v57 }
0x1380   :  { %v2940_v58 = vsel %vm2860_vm1, %v2939_v37, 0.0 }
0x1381   :  { %2941 = vadd.xlane.f32.xlu0 %v2940_v58 }
0x140a   :  { %v2942_v61 = vpop.xlane.xlu0 %2941 }
0x140b   :  { %v2947_v62 = vadd.f32 %v2946_v60, %v2942_v61 }
0x140d   :  { %2949 = vrot.lane.b32.xlu1 %v2947_v62, %s3351_s23 }
0x147f   :  { %v2950_v63 = vpop.permute.xlu1 %2949 }
0x1480   :  { %2953 = vst.msk [vmem:[%s3863_s6] sm:$0x3] %vm2952_vm3, %v2950_v63 }

</bundles_post_ra>
